<compile_context>
chip_gen: v7x
topology: tpu7x:2x2x1
jax: 0.10.0
libtpu: 0.0.40
codegen_flags: <defaults>
</compile_context>

<pallas_src>
import functools

import jax
import jax.numpy as jnp
from jax import lax
from jax.experimental import pallas as pl
from jax.experimental.pallas import tpu as pltpu


def _weightdrop_lstm_kernel(x_ref, wih_ref, whh_ref, b_ref,
                            out_ref, hn_ref, cn_ref,
                            h_sc, c_sc, xg_sc, *, t_chunk, Hp, unroll):
    """One (batch-chunk, time-chunk) grid step of the LSTM recurrence.

    x_ref   : (tT, tB, I)      input chunk (time-major), bf16/f32 MXU operand
    wih_ref : (I, 4Hp)         W_ih^T, gates permuted to (i, f, o, g), lane-padded
    whh_ref : (Hp, 4Hp)        dropped W_hh^T, same permutation/padding
    b_ref   : (1, 4Hp)         b_ih + b_hh (f32), same permutation/padding
    out_ref : (tT, tB, Hp)     hidden states for this chunk (f32)
    hn_ref, cn_ref : (tB, Hp)  final h / c for this batch chunk
    h_sc, c_sc     : (tB, Hp)  recurrent state carried across time-chunks (VMEM scratch)
    xg_sc          : (tT, tB, 4Hp) hoisted input projection + bias (VMEM scratch, f32)
    """
    t_idx = pl.program_id(1)

    @pl.when(t_idx == 0)
    def _init():
        h_sc[...] = jnp.zeros_like(h_sc)
        c_sc[...] = jnp.zeros_like(c_sc)

    # ---- Hoisted input projection: ONE MXU matmul per chunk, off the critical h->h
    # ---- chain; bias folded in here (single broadcast per chunk, not per step).
    tT, tB, I = x_ref.shape
    x_flat = x_ref[...].reshape(tT * tB, I)          # layout-trivial: tB % sublane == 0
    xg = jnp.dot(x_flat, wih_ref[...], preferred_element_type=jnp.float32)
    xg_sc[...] = (xg + b_ref[...]).reshape(tT, tB, 4 * Hp)

    mx_dtype = whh_ref.dtype                          # bf16: single-pass MXU everywhere

    def step(t, carry):
        h, c = carry
        # Only work on the dependent chain: one (tB, Hp) x (Hp, 4Hp) bf16 matmul.
        gates = xg_sc[t] + jnp.dot(h.astype(mx_dtype), whh_ref[...],
                                   preferred_element_type=jnp.float32)
        # Gate order (i, f, o, g): one sigmoid slab + one tanh slab (2 EUP dispatches).
        sig = jax.nn.sigmoid(gates[:, :3 * Hp])
        g_g = jnp.tanh(gates[:, 3 * Hp:])
        i_g = sig[:, 0 * Hp:1 * Hp]
        f_g = sig[:, 1 * Hp:2 * Hp]
        o_g = sig[:, 2 * Hp:3 * Hp]
        c_new = f_g * c + i_g * g_g
        h_new = o_g * jnp.tanh(c_new)
        out_ref[t] = h_new.astype(out_ref.dtype)      # lane-dense store (Hp % 128 == 0)
        return h_new, c_new

    # TODO(synk): interleave two independent batch sub-chunks per iteration to hide the
    # MXU->EUP->VPU dependent-chain latency when tB*Hp is small; optionally hold W_hh^T
    # in MXU weight registers (matmul_push_rhs) across the loop on v5e.
    hN, cN = lax.fori_loop(0, t_chunk, step, (h_sc[...], c_sc[...]), unroll=unroll)
    h_sc[...] = hN
    c_sc[...] = cN

    @pl.when(t_idx == pl.num_programs(1) - 1)
    def _finalize():
        hn_ref[...] = hN.astype(hn_ref.dtype)
        cn_ref[...] = cN.astype(cn_ref.dtype)


def apply_weight_dropout(w, dropout_rate, key, training):
    """F.dropout(w, p, training): Bernoulli keep prob 1-p, kept values scaled by 1/(1-p).
    NOTE: uses jax.random, i.e. a different RNG stream than torch (distributionally
    identical, not bit-exact)."""
    p = float(dropout_rate)
    if not training or p <= 0.0:
        return w
    if p >= 1.0:                      # guard divide-by-zero; PyTorch zeroes the tensor
        return jnp.zeros_like(w)
    if key is None:
        raise ValueError("WeightDrop in training mode with p>0 requires a PRNG key")
    keep = jax.random.bernoulli(key, 1.0 - p, w.shape)
    return jnp.where(keep, w / (1.0 - p), jnp.zeros_like(w))


def _permute_and_pad_gates(w, Hp):
    """w: (4H, ...) in PyTorch gate order (i, f, g, o) -> (4Hp, ...) in order
    (i, f, o, g), each gate's H rows zero-padded to Hp (lane-aligned gate blocks)."""
    i, f, g, o = jnp.split(w, 4, axis=0)
    H = i.shape[0]
    pad = [(0, Hp - H)] + [(0, 0)] * (w.ndim - 1)
    return jnp.concatenate([jnp.pad(blk, pad) for blk in (i, f, o, g)], axis=0)


def _largest_divisor_leq(n, cap, multiple_of=1):
    for d in range(min(n, max(1, cap)), 0, -1):
        if n % d == 0 and d % multiple_of == 0:
            return d
    return None


def weight_drop_lstm_forward(x, w_ih, w_hh, b_ih, b_hh, *, dropout_rate, key=None,
                             training=True, t_chunk=None, b_chunk=None,
                             matmul_dtype=jnp.bfloat16):
    """x: (T, B, I); w_ih: (4H, I); w_hh: (4H, H); biases: (4H,).
    Returns (output (T, B, H), (h_n (1, B, H), c_n (1, B, H))).

    matmul_dtype: dtype of the MXU operands (x, W_ih, W_hh and the per-step h cast).
    Gate / state / accumulation math stays f32 (no bf16 VPU/EUP on v5e)."""
    T, B, I = x.shape
    H4 = w_ih.shape[0]
    H = H4 // 4
    Hp = ((H + 127) // 128) * 128          # lane-align each gate block and the output store
    Hp4 = 4 * Hp

    # ---- WeightDrop: dropout applied to the raw hidden-to-hidden weight ------------
    w_hh_d = apply_weight_dropout(w_hh, dropout_rate, key, training)

    # ---- layout: permute gates to (i, f, o, g), pad H -> Hp, transpose to (., 4Hp) --
    wih_t = _permute_and_pad_gates(w_ih, Hp).T.astype(matmul_dtype)          # (I, 4Hp)
    whh_t = _permute_and_pad_gates(w_hh_d, Hp).T                              # (H, 4Hp)
    whh_t = jnp.pad(whh_t, ((0, Hp - H), (0, 0))).astype(matmul_dtype)        # (Hp, 4Hp)
    bias = _permute_and_pad_gates(b_ih + b_hh, Hp).reshape(1, Hp4).astype(jnp.float32)
    x_in = x.astype(matmul_dtype)

    sublane = 16 if x_in.dtype.itemsize == 2 else 8

    # ---- chunk sizes ----------------------------------------------------------------
    if b_chunk is None:
        # Fill the MXU M dimension (128 on v5e, 256 on v6e/v7x) while keeping >= 2
        # batch programs when possible so "parallel" shards across v7x's 2 TensorCores.
        b_chunk = _largest_divisor_leq(B, min(256, B // 2), multiple_of=sublane) or B
    if t_chunk is None:
        # ~8 MiB per-chunk streamed/scratch traffic (x + out double-buffered, plus xg).
        bytes_per_t = b_chunk * (2 * I * x_in.dtype.itemsize + 2 * Hp * 4 + Hp4 * 4)
        t_chunk = _largest_divisor_leq(T, (8 << 20) // max(1, bytes_per_t)) or 1
    assert T % t_chunk == 0, "t_chunk must divide T"
    assert B % b_chunk == 0, "b_chunk must divide B"
    assert b_chunk == B or b_chunk % sublane == 0, (
        "b_chunk must be B or a multiple of the sublane packing (8 f32 / 16 bf16)")

    # ---- VMEM budget: every in/out spec is double-buffered by Pallas ----------------
    est = (2 * t_chunk * b_chunk * I * x_in.dtype.itemsize        # x stream
           + 2 * t_chunk * b_chunk * Hp * 4                       # out stream
           + 2 * (I * Hp4 * wih_t.dtype.itemsize                  # W_ih^T (resident)
                  + Hp * Hp4 * whh_t.dtype.itemsize               # W_hh^T (resident)
                  + Hp4 * 4)                                      # bias
           + 2 * 2 * b_chunk * Hp * 4                             # h_n, c_n outputs
           + t_chunk * b_chunk * Hp4 * 4                          # xg scratch
           + 2 * b_chunk * Hp * 4)                                # h, c scratch
    # ~25% headroom for Mosaic internal scratch, clamped below v7x's 64 MiB VMEM.
    vmem_limit = int(min(max(est * 5 // 4, 8 << 20), 56 << 20))

    # Unroll less once the per-step gate tile gets big (vreg live-range pressure).
    gate_bytes = b_chunk * Hp4 * 4
    unroll = min(t_chunk,
                 8 if gate_bytes <= (64 << 10) else (4 if gate_bytes <= (256 << 10) else 2))

    kernel = functools.partial(_weightdrop_lstm_kernel,
                               t_chunk=t_chunk, Hp=Hp, unroll=unroll)

    out, h_n, c_n = pl.pallas_call(
        kernel,
        out_shape=(
            jax.ShapeDtypeStruct((T, B, Hp), jnp.float32),
            jax.ShapeDtypeStruct((B, Hp), jnp.float32),
            jax.ShapeDtypeStruct((B, Hp), jnp.float32),
        ),
        grid=(B // b_chunk, T // t_chunk),
        in_specs=[
            pl.BlockSpec((t_chunk, b_chunk, I), lambda b, t: (t, b, 0)),   # x chunk
            pl.BlockSpec((I, Hp4), lambda b, t: (0, 0)),                   # W_ih^T (resident)
            pl.BlockSpec((Hp, Hp4), lambda b, t: (0, 0)),                  # dropped W_hh^T
            pl.BlockSpec((1, Hp4), lambda b, t: (0, 0)),                   # bias
        ],
        out_specs=(
            pl.BlockSpec((t_chunk, b_chunk, Hp), lambda b, t: (t, b, 0)),  # output
            pl.BlockSpec((b_chunk, Hp), lambda b, t: (b, 0)),              # h_n
            pl.BlockSpec((b_chunk, Hp), lambda b, t: (b, 0)),              # c_n
        ),
        scratch_shapes=[
            pltpu.VMEM((b_chunk, Hp), jnp.float32),               # h across time-chunks
            pltpu.VMEM((b_chunk, Hp), jnp.float32),               # c across time-chunks
            pltpu.VMEM((t_chunk, b_chunk, Hp4), jnp.float32),     # hoisted input projection
        ],
        compiler_params=pltpu.CompilerParams(
            dimension_semantics=("parallel", "arbitrary"),
            vmem_limit_bytes=vmem_limit),
    )(x_in, wih_t, whh_t, bias)

    # Strip lane padding (no-op when H is already a multiple of 128).
    out = out[..., :H]
    h_n = h_n[:, :H]
    c_n = c_n[:, :H]
    return out, (h_n[None], c_n[None])


def _reference_lstm(x, w_ih, w_hh, b_ih, b_hh, cast_dtype=jnp.float32):
    """Pure-JAX single-layer LSTM (PyTorch gate order), zero initial state.
    cast_dtype lets the reference mirror the kernel's bf16 MXU operands."""
    _, B, _ = x.shape
    H = w_ih.shape[0] // 4
    wih_t = w_ih.T.astype(cast_dtype)
    whh_t = w_hh.T.astype(cast_dtype)
    b = (b_ih + b_hh).astype(jnp.float32)

    def step(carry, x_t):
        h, c = carry
        gates = (jnp.dot(x_t.astype(cast_dtype), wih_t, preferred_element_type=jnp.float32)
                 + jnp.dot(h.astype(cast_dtype), whh_t, preferred_element_type=jnp.float32)
                 + b)
        i = jax.nn.sigmoid(gates[:, 0 * H:1 * H])
        f = jax.nn.sigmoid(gates[:, 1 * H:2 * H])
        g = jnp.tanh(gates[:, 2 * H:3 * H])
        o = jax.nn.sigmoid(gates[:, 3 * H:4 * H])
        c = f * c + i * g
        h = o * jnp.tanh(c)
        return (h, c), h

    init = (jnp.zeros((B, H), jnp.float32), jnp.zeros((B, H), jnp.float32))
    (hN, cN), out = lax.scan(step, init, x)
    return out, hN, cN


if __name__ == "__main__":
    # Small shapes: seq T=8, batch B=32, input I=32, hidden H=32 (gate blocks pad to 128 lanes).
    T, B, I, H = 8, 32, 32, 32
    dropout_rate = 0.5
    key = jax.random.PRNGKey(0)
    kd, kx, k1, k2, k3, k4 = jax.random.split(key, 6)

    bound = 1.0 / (H ** 0.5)
    x = jax.random.normal(kx, (T, B, I), dtype=jnp.float32)
    w_ih = jax.random.uniform(k1, (4 * H, I), jnp.float32, -bound, bound)
    w_hh = jax.random.uniform(k2, (4 * H, H), jnp.float32, -bound, bound)  # dropped weight
    b_ih = jax.random.uniform(k3, (4 * H,), jnp.float32, -bound, bound)
    b_hh = jax.random.uniform(k4, (4 * H,), jnp.float32, -bound, bound)

    # t_chunk=4, b_chunk=16 -> grid (2, 2): exercises the batch-parallel axis (2 programs,
    # one per v7x TensorCore) and the streamed time axis with scratch-carried state.
    out, (h_n, c_n) = weight_drop_lstm_forward(
        x, w_ih, w_hh, b_ih, b_hh, dropout_rate=dropout_rate, key=kd,
        training=True, t_chunk=4, b_chunk=16)
    jax.block_until_ready((out, h_n, c_n))

    assert out.shape == (T, B, H)
    assert h_n.shape == (1, B, H) and c_n.shape == (1, B, H)
    assert bool(jnp.all(jnp.isfinite(out)))

    # Pure-JAX references using the same dropped weight (same key -> same mask).
    w_hh_d = apply_weight_dropout(w_hh, dropout_rate, kd, True)

    # (1) Tight check against a reference that mirrors the kernel's bf16 MXU operands.
    ref_out, ref_h, ref_c = _reference_lstm(x, w_ih, w_hh_d, b_ih, b_hh,
                                            cast_dtype=jnp.bfloat16)
    assert bool(jnp.allclose(out, ref_out, atol=5e-3, rtol=5e-3))
    assert bool(jnp.allclose(h_n[0], ref_h, atol=5e-3, rtol=5e-3))
    assert bool(jnp.allclose(c_n[0], ref_c, atol=5e-3, rtol=5e-3))

    # (2) Loose sanity check against the pure-f32 LSTM (the PyTorch-module semantics);
    #     the only gap is the usual bf16-matmul rounding.
    f32_out, f32_h, _ = _reference_lstm(x, w_ih, w_hh_d, b_ih, b_hh,
                                        cast_dtype=jnp.float32)
    assert float(jnp.max(jnp.abs(out - f32_out))) < 6e-2
    assert float(jnp.max(jnp.abs(h_n[0] - f32_h))) < 6e-2

    print("KERNEL_OK")
</pallas_src>

<mosaic_0001>
module attributes {stable_mosaic.version = 11 : i64} {
  func.func @_weightdrop_lstm_kernel(%arg0: i32, %arg1: i32, %arg2: memref<4x16x32xbf16, #tpu.memory_space<vmem>>, %arg3: memref<32x512xbf16, #tpu.memory_space<vmem>>, %arg4: memref<128x512xbf16, #tpu.memory_space<vmem>>, %arg5: memref<1x512xf32, #tpu.memory_space<vmem>>, %arg6: memref<4x16x128xf32, #tpu.memory_space<vmem>>, %arg7: memref<16x128xf32, #tpu.memory_space<vmem>>, %arg8: memref<16x128xf32, #tpu.memory_space<vmem>>, %arg9: memref<16x128xf32, #tpu.memory_space<vmem>>, %arg10: memref<16x128xf32, #tpu.memory_space<vmem>>, %arg11: memref<4x16x512xf32, #tpu.memory_space<vmem>>) attributes {dimension_semantics = [#tpu.dimension_semantics<parallel>, #tpu.dimension_semantics<arbitrary>], iteration_bounds = array<i64: 2, 2>, scalar_prefetch = 0 : i64, scratch_operands = 3 : i64, tpu.core_type = #tpu.core_type<tc>, window_params = [{transform_indices = @transform_0, window_bounds = array<i64: 4, 16, 32>}, {pipeline_mode = #tpu.pipeline_mode<synchronous>, transform_indices = @transform_1, window_bounds = array<i64: 32, 512>}, {pipeline_mode = #tpu.pipeline_mode<synchronous>, transform_indices = @transform_2, window_bounds = array<i64: 128, 512>}, {pipeline_mode = #tpu.pipeline_mode<synchronous>, transform_indices = @transform_3, window_bounds = array<i64: 1, 512>}, {transform_indices = @transform_4, window_bounds = array<i64: 4, 16, 128>}, {transform_indices = @transform_5, window_bounds = array<i64: 16, 128>}, {transform_indices = @transform_6, window_bounds = array<i64: 16, 128>}]} {
    %c0_i32 = arith.constant 0 : i32
    %0 = arith.cmpi eq, %arg1, %c0_i32 : i32
    %1 = arith.extui %0 : i1 to i32
    %c0_i32_0 = arith.constant 0 : i32
    %2 = arith.cmpi ne, %1, %c0_i32_0 : i32
    scf.if %2 {
      %cst_53 = arith.constant 0.000000e+00 : f32
      %127 = vector.broadcast %cst_53 : f32 to vector<16x128xf32>
      %c0_54 = arith.constant 0 : index
      %c0_55 = arith.constant 0 : index
      %128 = vector.load %arg9[%c0_54, %c0_55] : memref<16x128xf32, #tpu.memory_space<vmem>>, vector<16x128xf32>
      tpu.vector_store %arg9[%c0_54, %c0_55], %127 {strides = array<i32>} : memref<16x128xf32, #tpu.memory_space<vmem>>, vector<16x128xf32>,
      %cst_56 = arith.constant 0.000000e+00 : f32
      %129 = vector.broadcast %cst_56 : f32 to vector<16x128xf32>
      %c0_57 = arith.constant 0 : index
      %c0_58 = arith.constant 0 : index
      %130 = vector.load %arg10[%c0_57, %c0_58] : memref<16x128xf32, #tpu.memory_space<vmem>>, vector<16x128xf32>
      tpu.vector_store %arg10[%c0_57, %c0_58], %129 {strides = array<i32>} : memref<16x128xf32, #tpu.memory_space<vmem>>, vector<16x128xf32>,
    } else {
    }
    %c0 = arith.constant 0 : index
    %c0_1 = arith.constant 0 : index
    %c0_2 = arith.constant 0 : index
    %3 = vector.load %arg2[%c0, %c0_1, %c0_2] : memref<4x16x32xbf16, #tpu.memory_space<vmem>>, vector<4x16x32xbf16>
    %4 = vector.shape_cast %3 : vector<4x16x32xbf16> to vector<64x32xbf16>
    %c0_3 = arith.constant 0 : index
    %c0_4 = arith.constant 0 : index
    %5 = vector.load %arg3[%c0_3, %c0_4] : memref<32x512xbf16, #tpu.memory_space<vmem>>, vector<32x512xbf16>
    %cst = arith.constant dense<0.000000e+00> : vector<64x512xf32>
    %6 = tpu.matmul %4, %5, %cst {dimension_numbers = #tpu.dot_dimension_numbers<[1], [0], [0], [1], [0, 0, 1, 1], [], []>} : vector<64x32xbf16>, vector<32x512xbf16>, vector<64x512xf32> -> vector<64x512xf32>
    %c0_5 = arith.constant 0 : index
    %c0_6 = arith.constant 0 : index
    %7 = vector.load %arg5[%c0_5, %c0_6] : memref<1x512xf32, #tpu.memory_space<vmem>>, vector<1x512xf32>
    %8 = vector.broadcast %7 : vector<1x512xf32> to vector<64x512xf32>
    %9 = arith.addf %6, %8 : vector<64x512xf32>
    %10 = vector.shape_cast %9 : vector<64x512xf32> to vector<4x16x512xf32>
    %c0_7 = arith.constant 0 : index
    %c0_8 = arith.constant 0 : index
    %c0_9 = arith.constant 0 : index
    %11 = vector.load %arg11[%c0_7, %c0_8, %c0_9] : memref<4x16x512xf32, #tpu.memory_space<vmem>>, vector<4x16x512xf32>
    tpu.vector_store %arg11[%c0_7, %c0_8, %c0_9], %10 {strides = array<i32>} : memref<4x16x512xf32, #tpu.memory_space<vmem>>, vector<4x16x512xf32>,
    %c0_10 = arith.constant 0 : index
    %c0_11 = arith.constant 0 : index
    %12 = vector.load %arg9[%c0_10, %c0_11] : memref<16x128xf32, #tpu.memory_space<vmem>>, vector<16x128xf32>
    %c0_12 = arith.constant 0 : index
    %c0_13 = arith.constant 0 : index
    %13 = vector.load %arg10[%c0_12, %c0_13] : memref<16x128xf32, #tpu.memory_space<vmem>>, vector<16x128xf32>
    %c0_i32_14 = arith.constant 0 : i32
    %14 = arith.index_cast %c0_i32_14 : i32 to index
    %c0_15 = arith.constant 0 : index
    %c0_16 = arith.constant 0 : index
    %15 = vector.load %arg11[%14, %c0_15, %c0_16] : memref<4x16x512xf32, #tpu.memory_space<vmem>>, vector<1x16x512xf32>
    %16 = vector.shape_cast %15 : vector<1x16x512xf32> to vector<16x512xf32>
    %17 = arith.truncf %12 : vector<16x128xf32> to vector<16x128xbf16>
    %c0_17 = arith.constant 0 : index
    %c0_18 = arith.constant 0 : index
    %18 = vector.load %arg4[%c0_17, %c0_18] : memref<128x512xbf16, #tpu.memory_space<vmem>>, vector<128x512xbf16>
    %cst_19 = arith.constant dense<0.000000e+00> : vector<16x512xf32>
    %19 = tpu.matmul %17, %18, %cst_19 {dimension_numbers = #tpu.dot_dimension_numbers<[1], [0], [0], [1], [0, 0, 1, 1], [], []>} : vector<16x128xbf16>, vector<128x512xbf16>, vector<16x512xf32> -> vector<16x512xf32>
    %20 = arith.addf %16, %19 : vector<16x512xf32>
    %21 = vector.extract_strided_slice %20 {offsets = [0, 0], sizes = [16, 384], strides = [1, 1]} : vector<16x512xf32> to vector<16x384xf32>
    %22 = arith.negf %21 : vector<16x384xf32>
    %23 = math.exp %22 : vector<16x384xf32>
    %cst_20 = arith.constant 1.000000e+00 : f32
    %24 = vector.broadcast %cst_20 : f32 to vector<16x384xf32>
    %25 = arith.addf %24, %23 : vector<16x384xf32>
    %26 = arith.divf %24, %25 : vector<16x384xf32>
    %27 = vector.extract_strided_slice %20 {offsets = [0, 384], sizes = [16, 128], strides = [1, 1]} : vector<16x512xf32> to vector<16x128xf32>
    %28 = math.tanh %27 : vector<16x128xf32>
    %29 = vector.extract_strided_slice %26 {offsets = [0, 0], sizes = [16, 128], strides = [1, 1]} : vector<16x384xf32> to vector<16x128xf32>
    %30 = vector.extract_strided_slice %26 {offsets = [0, 128], sizes = [16, 128], strides = [1, 1]} : vector<16x384xf32> to vector<16x128xf32>
    %31 = vector.extract_strided_slice %26 {offsets = [0, 256], sizes = [16, 128], strides = [1, 1]} : vector<16x384xf32> to vector<16x128xf32>
    %32 = arith.mulf %30, %13 : vector<16x128xf32>
    %33 = arith.mulf %29, %28 : vector<16x128xf32>
    %34 = arith.addf %32, %33 : vector<16x128xf32>
    %35 = math.tanh %34 : vector<16x128xf32>
    %36 = arith.mulf %31, %35 : vector<16x128xf32>
    %37 = arith.index_cast %c0_i32_14 : i32 to index
    %c0_21 = arith.constant 0 : index
    %c0_22 = arith.constant 0 : index
    %38 = vector.load %arg6[%37, %c0_21, %c0_22] : memref<4x16x128xf32, #tpu.memory_space<vmem>>, vector<1x16x128xf32>
    %39 = vector.shape_cast %38 : vector<1x16x128xf32> to vector<16x128xf32>
    %40 = vector.shape_cast %36 : vector<16x128xf32> to vector<1x16x128xf32>
    tpu.vector_store %arg6[%37, %c0_21, %c0_22], %40 {strides = array<i32>} : memref<4x16x128xf32, #tpu.memory_space<vmem>>, vector<1x16x128xf32>,
    %c1_i32 = arith.constant 1 : i32
    %41 = arith.index_cast %c1_i32 : i32 to index
    %c0_23 = arith.constant 0 : index
    %c0_24 = arith.constant 0 : index
    %42 = vector.load %arg11[%41, %c0_23, %c0_24] : memref<4x16x512xf32, #tpu.memory_space<vmem>>, vector<1x16x512xf32>
    %43 = vector.shape_cast %42 : vector<1x16x512xf32> to vector<16x512xf32>
    %44 = arith.truncf %36 : vector<16x128xf32> to vector<16x128xbf16>
    %c0_25 = arith.constant 0 : index
    %c0_26 = arith.constant 0 : index
    %45 = vector.load %arg4[%c0_25, %c0_26] : memref<128x512xbf16, #tpu.memory_space<vmem>>, vector<128x512xbf16>
    %cst_27 = arith.constant dense<0.000000e+00> : vector<16x512xf32>
    %46 = tpu.matmul %44, %45, %cst_27 {dimension_numbers = #tpu.dot_dimension_numbers<[1], [0], [0], [1], [0, 0, 1, 1], [], []>} : vector<16x128xbf16>, vector<128x512xbf16>, vector<16x512xf32> -> vector<16x512xf32>
    %47 = arith.addf %43, %46 : vector<16x512xf32>
    %48 = vector.extract_strided_slice %47 {offsets = [0, 0], sizes = [16, 384], strides = [1, 1]} : vector<16x512xf32> to vector<16x384xf32>
    %49 = arith.negf %48 : vector<16x384xf32>
    %50 = math.exp %49 : vector<16x384xf32>
    %cst_28 = arith.constant 1.000000e+00 : f32
    %51 = vector.broadcast %cst_28 : f32 to vector<16x384xf32>
    %52 = arith.addf %51, %50 : vector<16x384xf32>
    %53 = arith.divf %51, %52 : vector<16x384xf32>
    %54 = vector.extract_strided_slice %47 {offsets = [0, 384], sizes = [16, 128], strides = [1, 1]} : vector<16x512xf32> to vector<16x128xf32>
    %55 = math.tanh %54 : vector<16x128xf32>
    %56 = vector.extract_strided_slice %53 {offsets = [0, 0], sizes = [16, 128], strides = [1, 1]} : vector<16x384xf32> to vector<16x128xf32>
    %57 = vector.extract_strided_slice %53 {offsets = [0, 128], sizes = [16, 128], strides = [1, 1]} : vector<16x384xf32> to vector<16x128xf32>
    %58 = vector.extract_strided_slice %53 {offsets = [0, 256], sizes = [16, 128], strides = [1, 1]} : vector<16x384xf32> to vector<16x128xf32>
    %59 = arith.mulf %57, %34 : vector<16x128xf32>
    %60 = arith.mulf %56, %55 : vector<16x128xf32>
    %61 = arith.addf %59, %60 : vector<16x128xf32>
    %62 = math.tanh %61 : vector<16x128xf32>
    %63 = arith.mulf %58, %62 : vector<16x128xf32>
    %64 = arith.index_cast %c1_i32 : i32 to index
    %c0_29 = arith.constant 0 : index
    %c0_30 = arith.constant 0 : index
    %65 = vector.load %arg6[%64, %c0_29, %c0_30] : memref<4x16x128xf32, #tpu.memory_space<vmem>>, vector<1x16x128xf32>
    %66 = vector.shape_cast %65 : vector<1x16x128xf32> to vector<16x128xf32>
    %67 = vector.shape_cast %63 : vector<16x128xf32> to vector<1x16x128xf32>
    tpu.vector_store %arg6[%64, %c0_29, %c0_30], %67 {strides = array<i32>} : memref<4x16x128xf32, #tpu.memory_space<vmem>>, vector<1x16x128xf32>,
    %c2_i32 = arith.constant 2 : i32
    %68 = arith.index_cast %c2_i32 : i32 to index
    %c0_31 = arith.constant 0 : index
    %c0_32 = arith.constant 0 : index
    %69 = vector.load %arg11[%68, %c0_31, %c0_32] : memref<4x16x512xf32, #tpu.memory_space<vmem>>, vector<1x16x512xf32>
    %70 = vector.shape_cast %69 : vector<1x16x512xf32> to vector<16x512xf32>
    %71 = arith.truncf %63 : vector<16x128xf32> to vector<16x128xbf16>
    %c0_33 = arith.constant 0 : index
    %c0_34 = arith.constant 0 : index
    %72 = vector.load %arg4[%c0_33, %c0_34] : memref<128x512xbf16, #tpu.memory_space<vmem>>, vector<128x512xbf16>
    %cst_35 = arith.constant dense<0.000000e+00> : vector<16x512xf32>
    %73 = tpu.matmul %71, %72, %cst_35 {dimension_numbers = #tpu.dot_dimension_numbers<[1], [0], [0], [1], [0, 0, 1, 1], [], []>} : vector<16x128xbf16>, vector<128x512xbf16>, vector<16x512xf32> -> vector<16x512xf32>
    %74 = arith.addf %70, %73 : vector<16x512xf32>
    %75 = vector.extract_strided_slice %74 {offsets = [0, 0], sizes = [16, 384], strides = [1, 1]} : vector<16x512xf32> to vector<16x384xf32>
    %76 = arith.negf %75 : vector<16x384xf32>
    %77 = math.exp %76 : vector<16x384xf32>
    %cst_36 = arith.constant 1.000000e+00 : f32
    %78 = vector.broadcast %cst_36 : f32 to vector<16x384xf32>
    %79 = arith.addf %78, %77 : vector<16x384xf32>
    %80 = arith.divf %78, %79 : vector<16x384xf32>
    %81 = vector.extract_strided_slice %74 {offsets = [0, 384], sizes = [16, 128], strides = [1, 1]} : vector<16x512xf32> to vector<16x128xf32>
    %82 = math.tanh %81 : vector<16x128xf32>
    %83 = vector.extract_strided_slice %80 {offsets = [0, 0], sizes = [16, 128], strides = [1, 1]} : vector<16x384xf32> to vector<16x128xf32>
    %84 = vector.extract_strided_slice %80 {offsets = [0, 128], sizes = [16, 128], strides = [1, 1]} : vector<16x384xf32> to vector<16x128xf32>
    %85 = vector.extract_strided_slice %80 {offsets = [0, 256], sizes = [16, 128], strides = [1, 1]} : vector<16x384xf32> to vector<16x128xf32>
    %86 = arith.mulf %84, %61 : vector<16x128xf32>
    %87 = arith.mulf %83, %82 : vector<16x128xf32>
    %88 = arith.addf %86, %87 : vector<16x128xf32>
    %89 = math.tanh %88 : vector<16x128xf32>
    %90 = arith.mulf %85, %89 : vector<16x128xf32>
    %91 = arith.index_cast %c2_i32 : i32 to index
    %c0_37 = arith.constant 0 : index
    %c0_38 = arith.constant 0 : index
    %92 = vector.load %arg6[%91, %c0_37, %c0_38] : memref<4x16x128xf32, #tpu.memory_space<vmem>>, vector<1x16x128xf32>
    %93 = vector.shape_cast %92 : vector<1x16x128xf32> to vector<16x128xf32>
    %94 = vector.shape_cast %90 : vector<16x128xf32> to vector<1x16x128xf32>
    tpu.vector_store %arg6[%91, %c0_37, %c0_38], %94 {strides = array<i32>} : memref<4x16x128xf32, #tpu.memory_space<vmem>>, vector<1x16x128xf32>,
    %c3_i32 = arith.constant 3 : i32
    %95 = arith.index_cast %c3_i32 : i32 to index
    %c0_39 = arith.constant 0 : index
    %c0_40 = arith.constant 0 : index
    %96 = vector.load %arg11[%95, %c0_39, %c0_40] : memref<4x16x512xf32, #tpu.memory_space<vmem>>, vector<1x16x512xf32>
    %97 = vector.shape_cast %96 : vector<1x16x512xf32> to vector<16x512xf32>
    %98 = arith.truncf %90 : vector<16x128xf32> to vector<16x128xbf16>
    %c0_41 = arith.constant 0 : index
    %c0_42 = arith.constant 0 : index
    %99 = vector.load %arg4[%c0_41, %c0_42] : memref<128x512xbf16, #tpu.memory_space<vmem>>, vector<128x512xbf16>
    %cst_43 = arith.constant dense<0.000000e+00> : vector<16x512xf32>
    %100 = tpu.matmul %98, %99, %cst_43 {dimension_numbers = #tpu.dot_dimension_numbers<[1], [0], [0], [1], [0, 0, 1, 1], [], []>} : vector<16x128xbf16>, vector<128x512xbf16>, vector<16x512xf32> -> vector<16x512xf32>
    %101 = arith.addf %97, %100 : vector<16x512xf32>
    %102 = vector.extract_strided_slice %101 {offsets = [0, 0], sizes = [16, 384], strides = [1, 1]} : vector<16x512xf32> to vector<16x384xf32>
    %103 = arith.negf %102 : vector<16x384xf32>
    %104 = math.exp %103 : vector<16x384xf32>
    %cst_44 = arith.constant 1.000000e+00 : f32
    %105 = vector.broadcast %cst_44 : f32 to vector<16x384xf32>
    %106 = arith.addf %105, %104 : vector<16x384xf32>
    %107 = arith.divf %105, %106 : vector<16x384xf32>
    %108 = vector.extract_strided_slice %101 {offsets = [0, 384], sizes = [16, 128], strides = [1, 1]} : vector<16x512xf32> to vector<16x128xf32>
    %109 = math.tanh %108 : vector<16x128xf32>
    %110 = vector.extract_strided_slice %107 {offsets = [0, 0], sizes = [16, 128], strides = [1, 1]} : vector<16x384xf32> to vector<16x128xf32>
    %111 = vector.extract_strided_slice %107 {offsets = [0, 128], sizes = [16, 128], strides = [1, 1]} : vector<16x384xf32> to vector<16x128xf32>
    %112 = vector.extract_strided_slice %107 {offsets = [0, 256], sizes = [16, 128], strides = [1, 1]} : vector<16x384xf32> to vector<16x128xf32>
    %113 = arith.mulf %111, %88 : vector<16x128xf32>
    %114 = arith.mulf %110, %109 : vector<16x128xf32>
    %115 = arith.addf %113, %114 : vector<16x128xf32>
    %116 = math.tanh %115 : vector<16x128xf32>
    %117 = arith.mulf %112, %116 : vector<16x128xf32>
    %118 = arith.index_cast %c3_i32 : i32 to index
    %c0_45 = arith.constant 0 : index
    %c0_46 = arith.constant 0 : index
    %119 = vector.load %arg6[%118, %c0_45, %c0_46] : memref<4x16x128xf32, #tpu.memory_space<vmem>>, vector<1x16x128xf32>
    %120 = vector.shape_cast %119 : vector<1x16x128xf32> to vector<16x128xf32>
    %121 = vector.shape_cast %117 : vector<16x128xf32> to vector<1x16x128xf32>
    tpu.vector_store %arg6[%118, %c0_45, %c0_46], %121 {strides = array<i32>} : memref<4x16x128xf32, #tpu.memory_space<vmem>>, vector<1x16x128xf32>,
    %c4_i32 = arith.constant 4 : i32
    %c0_47 = arith.constant 0 : index
    %c0_48 = arith.constant 0 : index
    %122 = vector.load %arg9[%c0_47, %c0_48] : memref<16x128xf32, #tpu.memory_space<vmem>>, vector<16x128xf32>
    tpu.vector_store %arg9[%c0_47, %c0_48], %117 {strides = array<i32>} : memref<16x128xf32, #tpu.memory_space<vmem>>, vector<16x128xf32>,
    %c0_49 = arith.constant 0 : index
    %c0_50 = arith.constant 0 : index
    %123 = vector.load %arg10[%c0_49, %c0_50] : memref<16x128xf32, #tpu.memory_space<vmem>>, vector<16x128xf32>
    tpu.vector_store %arg10[%c0_49, %c0_50], %115 {strides = array<i32>} : memref<16x128xf32, #tpu.memory_space<vmem>>, vector<16x128xf32>,
    %c1_i32_51 = arith.constant 1 : i32
    %124 = arith.cmpi eq, %arg1, %c1_i32_51 : i32
    %125 = arith.extui %124 : i1 to i32
    %c0_i32_52 = arith.constant 0 : i32
    %126 = arith.cmpi ne, %125, %c0_i32_52 : i32
    scf.if %126 {
      %c0_53 = arith.constant 0 : index
      %c0_54 = arith.constant 0 : index
      %127 = vector.load %arg7[%c0_53, %c0_54] : memref<16x128xf32, #tpu.memory_space<vmem>>, vector<16x128xf32>
      tpu.vector_store %arg7[%c0_53, %c0_54], %117 {strides = array<i32>} : memref<16x128xf32, #tpu.memory_space<vmem>>, vector<16x128xf32>,
      %c0_55 = arith.constant 0 : index
      %c0_56 = arith.constant 0 : index
      %128 = vector.load %arg8[%c0_55, %c0_56] : memref<16x128xf32, #tpu.memory_space<vmem>>, vector<16x128xf32>
      tpu.vector_store %arg8[%c0_55, %c0_56], %115 {strides = array<i32>} : memref<16x128xf32, #tpu.memory_space<vmem>>, vector<16x128xf32>,
    } else {
    }
    return
  }
  func.func @transform_0(%arg0: i32, %arg1: i32) -> (i32, i32, i32) {
    %c0_i32 = arith.constant 0 : i32
    %c0_i32_0 = arith.constant 0 : i32
    return %arg1, %arg0, %c0_i32 : i32, i32, i32
  }
  func.func @transform_1(%arg0: i32, %arg1: i32) -> (i32, i32) {
    %c0_i32 = arith.constant 0 : i32
    %c0_i32_0 = arith.constant 0 : i32
    %c0_i32_1 = arith.constant 0 : i32
    return %c0_i32, %c0_i32_0 : i32, i32
  }
  func.func @transform_2(%arg0: i32, %arg1: i32) -> (i32, i32) {
    %c0_i32 = arith.constant 0 : i32
    %c0_i32_0 = arith.constant 0 : i32
    %c0_i32_1 = arith.constant 0 : i32
    return %c0_i32, %c0_i32_0 : i32, i32
  }
  func.func @transform_3(%arg0: i32, %arg1: i32) -> (i32, i32) {
    %c0_i32 = arith.constant 0 : i32
    %c0_i32_0 = arith.constant 0 : i32
    %c0_i32_1 = arith.constant 0 : i32
    return %c0_i32, %c0_i32_0 : i32, i32
  }
  func.func @transform_4(%arg0: i32, %arg1: i32) -> (i32, i32, i32) {
    %c0_i32 = arith.constant 0 : i32
    %c0_i32_0 = arith.constant 0 : i32
    return %arg1, %arg0, %c0_i32 : i32, i32, i32
  }
  func.func @transform_5(%arg0: i32, %arg1: i32) -> (i32, i32) {
    %c0_i32 = arith.constant 0 : i32
    %c0_i32_0 = arith.constant 0 : i32
    return %arg0, %c0_i32 : i32, i32
  }
  func.func @transform_6(%arg0: i32, %arg1: i32) -> (i32, i32) {
    %c0_i32 = arith.constant 0 : i32
    %c0_i32_0 = arith.constant 0 : i32
    return %arg0, %c0_i32 : i32, i32
  }
}

</mosaic_0001>

<bundles_post_ra>
// kernel: tpu_custom_call.1
= control target key start
LH: loop header
LB: loop body
LE: loop exit
PB: predicated region body
PF: predicated region fallthrough
CT: control target
= control target key end

     0   :  { %s3909_s0 = inlined_call_operand.hbm [shape: bf16[8,32,32], index: 0, kind: input, shape index: {}]   ;;  %s3910_s1 = inlined_call_operand.hbm [shape: bf16[32,512], index: 1, kind: input, shape index: {}]   ;;  %s3911_s2 = inlined_call_operand.hbm [shape: bf16[128,512], index: 2, kind: input, shape index: {}]   ;;  %s3912_s3 = inlined_call_operand.vmem [shape: f32[1,512], index: 3, kind: input, shape index: {}]   ;;  %s3913_s4 = inlined_call_operand.hbm [shape: f32[8,32,128], index: 4, kind: output, shape index: {0}]   ;;  %s3914_s5 = inlined_call_operand.hbm [shape: f32[32,128], index: 5, kind: output, shape index: {1}]   ;;  %s3915_s6 = inlined_call_operand.hbm [shape: f32[32,128], index: 6, kind: output, shape index: {2}]  }
   0x1   :  { %3933 = sst [smem:[#allocation33_spill]] %s3913_s4 }
   0x2   :  { %3934 = sst [smem:[#allocation34_spill]] %s3914_s5 }
   0x3   :  { %3935 = sst [smem:[#allocation35_spill]] %s3915_s6 }
   0x4   :  { %12 = vsyncpa [#allocation6], 0 }
   0x5   :  { %14 = vsyncpa [#allocation6 + $0x1], 0 }
   0x6   :  { %15 = vsyncpa [#allocation9], 0 }
   0x7   :  { %16 = vsyncpa [#allocation7], 0 }
   0x8   :  { %18 = vsyncpa [#allocation7 + $0x1], 0 }
   0x9   :  { %19 = vsyncpa [#allocation13], 0 }
   0xa   :  { %21 = vsyncpa [#allocation13 + $0x1], 0  ;;  %s3232_s21 = smov 0   ;;  %s3234_s22 = smov 0  }
   0xb   :  { %s3236_s23 = smov 0   ;;  %s3238_s24 = smov 0  }
   0xc   :  { %s3240_s25 = smov 0   ;;  %s3242_s26 = smov 0  }
   0xd   :  { %s3244_s27 = smov 0   ;;  %s3246_s28 = smov 0  }
   0xe   :  { %s3248_s29 = smov 0   ;;  %s3250_s30 = smov 0  }
   0xf   :  { %s3252_s7 = smov 0  }
  0x10 LB: > { %3936 = sst [smem:[#allocation24_spill]] %s3140_s23  ;;  %s3288_s8 = sadd.s32 4294967295, %s3172_s7   ;;  %s3172_s7 = sphi %s3252_s7, %s27_s7   ;;  %s3168_s30 = sphi %s3250_s30, %s3985_s30   ;;  %s3164_s29 = sphi %s3248_s29, %s3984_s29   ;;  %s3160_s28 = sphi %s3246_s28, %s3983_s28   ;;  %s3156_s27 = sphi %s3244_s27, %s3982_s27   ;;  %s3152_s26 = sphi %s3242_s26, %s3981_s26   ;;  %s3148_s25 = sphi %s3240_s25, %s3980_s25   ;;  %s3144_s24 = sphi %s3238_s24, %s3979_s24   ;;  %s3140_s23 = sphi %s3236_s23, %s3973_s23   ;;  %s3136_s22 = sphi %s3234_s22, %s3978_s22   ;;  %s3132_s21 = sphi %s3232_s21, %s3977_s21  }
  0x11   : > { %3937 = sst [smem:[#allocation25_spill]] %s3144_s24  ;;  %s3919_s9 = sadd.s32 4294967294, %s3172_s7  }
  0x12   : > { %s36_s10 = sadd.s32 1, %s3164_s29  ;;  %s39_s11 = sadd.s32 1, %s3168_s30 }
  0x13   : > { %p37_p0 = scmp.ge.s32.totalorder %s36_s10, 2  ;;  %s48_s12 = sadd.s32 1, %s3152_s26 }
  0x14   : > { %p55_p1 = scmp.ne.s32.totalorder %s3152_s26, %s3148_s25  ;;  %p56_p2 = scmp.eq.s32.totalorder %s3172_s7, 0 }
  0x15   : > { %s3987_s10 = smov (%p37_p0, %s36_s10), 0  ;;  %s3989_s11 = smov (!%p37_p0, %s39_s11), %s3168_s30 }
  0x16   : > { %3938 = sst [smem:[#allocation26_spill]] %s3987_s10  ;;  %s43_s13 = ssub.s32 %s3164_s29, %s3987_s10 }
  0x17   : > { %p3302_p3 = por %p56_p2, %p55_p1  ;;  %p41_p4 = scmp.ge.s32.totalorder %s3989_s11, 2 }
  0x18   : > { %p61_p5 = scmp.ne.s32.totalorder %s3148_s25, %s3144_s24  ;;  %p3920_p6 = scmp.eq.s32.totalorder %s3288_s8, 0 }
  0x19   : > { %s3939_s14 = scalar_select %p3302_p3, 1, 0 }
  0x1a   : > { %p150_p7 = scmp.eq.s32.totalorder %s3288_s8, 3  ;;  %s3991_s11 = smov (%p41_p4, %s3989_s11), 0 }
  0x1b   : > { %3940 = sst [smem:[#allocation27_spill]] %s3991_s11  ;;  %p3314_p8 = por %p3920_p6, %p61_p5 }
  0x1c   : > { %p3320_p9 = por %p150_p7, %p55_p1  ;;  %s44_s17 = ssub.s32 %s3168_s30, %s3991_s11 }
  0x1d   : > { %s3941_s15 = scalar_select %p3314_p8, 1, 0 }
  0x1e   : > { %s3942_s16 = scalar_select %p3320_p9, 1, 0 }
  0x1f   : > { %p3328_p10 = scmp.eq.s32.totalorder %s3919_s9, 3  ;;  %s45_s19 = sor.u32 %s44_s17, %s43_s13 }
  0x20   : > { %p163_p11 = scmp.eq.s32.totalorder %s44_s17, 0  ;;  %p46_p12 = scmp.eq.s32.totalorder %s45_s19, 0 }
  0x21   : > { %p3334_p13 = por %p3328_p10, %p61_p5  ;;  %s165_s10 = sadd.s32 1, %s3140_s23 }
  0x22   : > { %p175_p0 = scmp.ne.s32.totalorder %s3140_s23, %s3136_s22  ;;  %p181_p2 = scmp.ne.s32.totalorder %s3136_s22, %s3132_s21 }
  0x23   : > { %s3944_s20 = scalar_select %p3334_p13, 1, 0 }
  0x24   : > { %s3342_s24 = scalar_select %p46_p12, %s3152_s26, %s48_s12  }
  0x25   : > { %3945 = sst [smem:[#allocation28_spill]] %s3944_s20  ;;  %p3349_p1 = por %p175_p0, %p150_p7 }
  0x26   : > { %3946 = sst [smem:[#allocation29_spill]] %s3342_s24  ;;  %p2327_p4 = scmp.ge.s32.totalorder %s3172_s7, 1 }
  0x27   : > { %s3345_s11 = scalar_select %p163_p11, %s3140_s23, %s165_s10  }
  0x28   : > { %s3948_s9 = scalar_select %p3349_p1, 1, 0 }
  0x29   : > { %3947 = sst [smem:[#allocation30_spill]] %s3345_s11  ;;  %p215_p6 = scmp.lt.s32.totalorder %s3172_s7, 5 }
  0x2a   : > { %3949 = sst [smem:[#allocation31_spill]] %s3948_s9  ;;  %p3359_p9 = por %p181_p2, %p3328_p10 }
  0x2b   : > { %p3363_p5 = pnand %p2327_p4, %p215_p6  ;;  %s3174_s10 = smov [#allocation8]  }
  0x2c   : > { %s3950_s13 = scalar_select %p3359_p9, 1, 0 }
  0x2d   : > { %s3952_s17 = scalar_select %p3363_p5, 1, 0 }
  0x2e   : > { %3951 = sst [smem:[#allocation32_spill]] %s3950_s13  ;;  %s227_s12 = sshll.u32 %s3174_s10, 4  ;;  %s228_s12 = int_to_ptr.vmem [resolvable:$true] %s227_s12 }
  0x2f   : > { %p2635_p7 = pneg %p3363_p5  ;;  %p3953_p11 = scmp.eq.s32.totalorder %s3288_s8, 0 }
  0x30   : > { %s3175_s18 = smov [#allocation10]   ;;  %s2958_s23 = scalar_lea.hbm %s3910_s1, 1024 }
  0x31   : > { %p3371_p12 = pnand %p2635_p7, %p3953_p11  ;;  %s240_s19 = sshll.u32 %s3175_s18, 4  ;;  %s3375_s19 = int_to_ptr.vmem [resolvable:$true] %s240_s19 }
  0x32   : > { %p2959_p6 = scmp.ne.s32.totalorder %s3910_s1, %s2958_s23  ;;  %p2965_p4 = scmp.lt.u32.totalorder %s2958_s23, %s3910_s1 }
  0x33   : > { %p2960_p10 = pneg %p3371_p12 }
  0x35   : > { %p2961_p0 = pnand %p2960_p10, %p2959_p6 }
  0x37   : > { %p2962_p2 = pneg %p2961_p0 }
  0x39   : > { %p2967_p7 = pnand %p2965_p4, %p2962_p2 }
  0x3b   : > { %2970 = shalt.err (!%p2967_p7)
}
  0x3c   : > { %s2971_s18 = scalar_lea.vmem %s228_s12, 1024  ;;  %p2979_p1 = scmp.lt.s32.totalorder %s228_s12, %s228_s12 }
  0x3d   : > { %p2972_p11 = scmp.ne.s32.totalorder %s228_s12, %s2971_s18  ;;  %p2980_p8 = scmp.lt.s32.totalorder %s2971_s18, %s2971_s18 }
  0x3f   : > { %p2974_p9 = pnand %p2972_p11, %p2960_p10  ;;  %p2981_p5 = por %p2980_p8, %p2979_p1 }
  0x41   : > { %p2975_p13 = pneg %p2974_p9 }
  0x43   : > { %p2982_p3 = pnand %p2981_p5, %p2975_p13 }
  0x45   : > { %2985 = shalt.err (!%p2982_p3)
}
  0x46   : > { %s3176_s24 = smov 256   ;;  %s3177_s11 = smov 16  }
  0x47   : > { %2638 = dma.hbm_to_vmem [thread:$0]  (!%p3371_p12), %s3910_s1, 1024, %s228_s12, [#allocation9], %s3176_s24, %s3176_s24, %s3177_s11  }
  0x48   : > { %s2986_s10 = scalar_lea.hbm %s3911_s2, 4096 }
  0x49   : > { %p2987_p9 = scmp.ne.s32.totalorder %s3911_s2, %s2986_s10  ;;  %p2993_p13 = scmp.lt.u32.totalorder %s2986_s10, %s3911_s2 }
  0x4b   : > { %p2989_p3 = pnand %p2987_p9, %p2960_p10 }
  0x4d   : > { %p2990_p8 = pneg %p2989_p3 }
  0x4f   : > { %p2995_p1 = pnand %p2993_p13, %p2990_p8 }
  0x51   : > { %2998 = shalt.err (!%p2995_p1)
}
  0x52   : > { %s2999_s12 = scalar_lea.vmem %s3375_s19, 4096  ;;  %p3007_p2 = scmp.lt.s32.totalorder %s3375_s19, %s3375_s19 }
  0x53   : > { %p3000_p5 = scmp.ne.s32.totalorder %s3375_s19, %s2999_s12  ;;  %p3008_p4 = scmp.lt.s32.totalorder %s2999_s12, %s2999_s12 }
  0x55   : > { %p3002_p6 = pnand %p3000_p5, %p2960_p10  ;;  %p3009_p7 = por %p3008_p4, %p3007_p2 }
  0x57   : > { %p3003_p0 = pneg %p3002_p6 }
  0x59   : > { %p3010_p11 = pnand %p3009_p7, %p3003_p0 }
  0x5b   : > { %3013 = shalt.err (!%p3010_p11)
}
  0x5c   : > { %2641 = dma.hbm_to_vmem [thread:$0]  (!%p3371_p12), %s3911_s2, 4096, %s3375_s19, [#allocation9], %s3176_s24, %s3176_s24, %s3177_s11  }
  0x5d   : > { %p2330_p9 = scmp.ge.s32.totalorder %s3172_s7, 4 }
  0x5f   : > { %253 = sbr.rel (%p2330_p9) target bundleno = 119 (0x77), region = 28 }
  0x66   : > { %s257_s9 = sand.u32 1, %s3152_s26   ;;  %s2333_s6 = sshll.u32 %s3168_s30, 1 }
  0x67   : > { %s2331_s23 = sshll.u32 %s257_s9, 5  ;;  %s2538_s21 = sshll.u32 %s3164_s29, 4 }
  0x68   : > { %s268_s20 = sadd.s32 %s2538_s21, %s2333_s6  ;;  %s261_s13 = scalar_lea.vmem [#allocation5], %s2331_s23 }
  0x69   : > { %s283_s10 = sshll.u32 %s261_s13, 4  ;;  %s2335_s19 = sshll.u32 %s268_s20, 6  ;;  %s284_s10 = int_to_ptr.vmem [resolvable:$true] %s283_s10 }
  0x6a   : > { %p3955_p12 = scmp.ne.s32.totalorder %s3939_s14, 0  ;;  %s3178_s11 = smov 256  }
  0x6b   : > { %s3179_s12 = smov 128   ;;  %s3180_s4 = smov 2  }
  0x6c   : > { %s2610_s24 = scalar_select %p3955_p12, [#allocation0], [#allocation19] }
  0x6d   : > { %2611 = sst [smem:[#allocation16]] (%p3955_p12), %s3178_s11  ;;  %s3181_s5 = smov 64  }
  0x6e   : > { %s275_s18 = sld [smem:[%s2610_s24]]   ;;  %s270_s21 = scalar_lea.hbm %s3909_s0, %s2335_s19 }
  0x6f   : > { %2612 = sst [smem:[#allocation16 + $0x1]] (%p3955_p12), %s3179_s12  ;;  %s3182_s20 = smov 4  }
  0x70   : > { %2613 = sst [smem:[#allocation16 + $0x2]] (%p3955_p12), %s3180_s4  ;;  %s258_s11 = scalar_lea.sflag [#allocation6], %s257_s9 }
  0x71   : > { %2614 = sst [smem:[#allocation16 + $0x3]] (%p3955_p12), %s3181_s5  ;;  %s3183_s12 = smov [#allocation15]  }
  0x72   : > { %2615 = sst [smem:[#allocation16 + $0x4]] (%p3955_p12), %s3181_s5 }
  0x73   : > { %2616 = sst [smem:[#allocation16 + $0x5]] (%p3955_p12), %s3182_s20 }
  0x74   : > { %s2336_s13 = sshll.u32 %s275_s18, 26 }
  0x75   : > { %s2337_s24 = sadd.s32 134217728, %s2336_s13 }
  0x76   : > { %2617 = dma.general (%p3955_p12), %s270_s21, 512, %s284_s10, %s258_s11, %s3183_s12, [#allocation16], %s2337_s24, 0  }
  0x77 PF: > { %p3956_p10 = scmp.ne.s32.totalorder %s3952_s17, 0 }
  0x78   : > { %s3450_s4 = sand.u32 (!%p3956_p10), 1, %s3148_s25   ;;  %p3957_p3 = scmp.ne.s32.totalorder (!%p3956_p10), %s3941_s15, 0 }
  0x79   : > { %308 = sbr.rel (%p3956_p10) target bundleno = 1304 (0x518), region = 36  ;;  %s2339_s19 = sshll.u32 (!%p3956_p10), %s3450_s4, 5 }
  0x7a   : > { %s311_s5 = scalar_lea.sflag (!%p3956_p10), [#allocation6], %s3450_s4  ;;  %s3454_s6 = scalar_lea.vmem (!%p3956_p10), [#allocation5], %s2339_s19 }
  0x80   : > { %3115 = dma.done.wait (%p3957_p3), %s311_s5, 512  }
  0x81   : > { %3117 = vsyncadd (%p3957_p3), %s311_s5, 4294966784  ;;  %p3958_p8 = scmp.eq.s32.totalorder %s3288_s8, 0 }
  0x83   : > { %3119 = dma.done.wait (%p3958_p8), [#allocation9], 5120   ;;  %p3959_p13 = pmov %p3958_p8 }
  0x84   : > { %s2342_s14 = sshll.u32 %s3450_s4, 6  ;;  %s351_s17 = sand.u32 1, %s3136_s22  }
  0x85   : > { %3121 = vsyncadd (%p3959_p13), [#allocation9], 4294962176  ;;  %s2343_s9 = sshll.u32 %s351_s17, 4  ;;  %s3466_s10 = scalar_lea.vmem [#allocation11], %s2342_s14 }
  0x86   : > { %s3468_s18 = scalar_lea.vmem [#allocation12], %s2343_s9  ;;  %s3470_s23 = scalar_lea.vmem [#allocation14], %s2343_s9 }
  0x87   : > { %p2345_p1 = scmp.ne.s32.totalorder %s3156_s27, 0 }
  0x88   : > { %v3184_v0 = vmov (!%p2345_p1), 0.0  }
  0x89   : > { %371 = sbr.rel (%p2345_p1) target bundleno = 144 (0x90), region = 52  ;;  %372 = vst [vmem:[#allocation2] sm:$0xff] (!%p2345_p1), %v3184_v0  ;;  %373 = vst [vmem:[#allocation2 + $0x8] sm:$0xff] (!%p2345_p1), %v3184_v0 }
  0x8a   : > { %374 = vst [vmem:[#allocation3] sm:$0xff] (!%p2345_p1), %v3184_v0  ;;  %375 = vst [vmem:[#allocation3 + $0x8] sm:$0xff] (!%p2345_p1), %v3184_v0 }
  0x90 PF: > { %v2766_v1 = vld [vmem:[#allocation8 + $0x4] ss:$16 sps:$4 sm:$0xff]   ;;  %v2768_v2 = vld [vmem:[#allocation8 + $0xc] ss:$16 sps:$4 sm:$0xff]   ;;  %v3185_v3 = vmov 0   ;;  %vm474_vm0 = vcmask 261120   ;;  %v394_v49 = vlaneseq }
  0x91   : > { %519 = vmatprep.mubr.bf16.mxu0 %v3185_v3  ;;  %592 = vmatprep.mubr.bf16.mxu1 %v3185_v3  ;;  %v2770_v4 = vld [vmem:[#allocation8] ss:$16 sps:$4 sm:$0xff]   ;;  %v2771_v5 = vld [vmem:[#allocation8 + $0x8] ss:$16 sps:$4 sm:$0xff]   ;;  %v2772_v6 = vld [vmem:[#allocation8 + $0x24] ss:$16 sps:$4 sm:$0xff]  }
  0x92   : > { %487 = vmatprep.subr.bf16.mxu0 %v2766_v1  ;;  %560 = vmatprep.subr.bf16.mxu1 %v2768_v2  ;;  %v2774_v7 = vld [vmem:[#allocation8 + $0x2c] ss:$16 sps:$4 sm:$0xff]   ;;  %v2776_v8 = vld [vmem:[#allocation8 + $0x20] ss:$16 sps:$4 sm:$0xff]   ;;  %v2777_v9 = vld [vmem:[#allocation8 + $0x28] ss:$16 sps:$4 sm:$0xff]  }
  0x93   : > { %488 = vmatpush1.bf16.msra.mxu0 %v2770_v4  ;;  %561 = vmatpush1.bf16.msra.mxu1 %v2771_v5  ;;  %v2778_v10 = vld [vmem:[%s3454_s6] sm:$0xff]   ;;  %v3480_v13 = vld [vmem:[#allocation10 + $0x8] ss:$16 sps:$4 sm:$0xff]   ;;  %v3482_v14 = vld [vmem:[#allocation10 + $0xc] ss:$16 sps:$4 sm:$0xff]   ;;  %v395_v50 = vshrl.u32 %v394_v49, 7 }
  0x94   : > { %489 = vmatprep.subr.bf16.mxu0 %v2772_v6  ;;  %562 = vmatprep.subr.bf16.mxu1 %v2774_v7  ;;  %v3476_v11 = vld [vmem:[#allocation10] ss:$16 sps:$4 sm:$0xff]   ;;  %v3478_v12 = vld [vmem:[#allocation10 + $0x4] ss:$16 sps:$4 sm:$0xff]   ;;  %v3492_v17 = vld [vmem:[#allocation10 + $0x2c] ss:$16 sps:$4 sm:$0xff]  }
  0x95   : > { %v3486_v15 = vld [vmem:[#allocation10 + $0x24] ss:$16 sps:$4 sm:$0xff]   ;;  %v3490_v16 = vld [vmem:[#allocation10 + $0x20] ss:$16 sps:$4 sm:$0xff]   ;;  %v3496_v18 = vld [vmem:[#allocation10 + $0x28] ss:$16 sps:$4 sm:$0xff]  }
  0x96   : > { %v3500_v19 = vld [vmem:[#allocation10 + $0x44] ss:$16 sps:$4 sm:$0xff]   ;;  %v2791_v20 = vld [vmem:[%s3454_s6 + $0x8] sm:$0xff]   ;;  %v3509_v22 = vld [vmem:[#allocation10 + $0x40] ss:$16 sps:$4 sm:$0xff]   ;;  %v396_v51 = vsub.s32 0, %v395_v50 }
  0x97   : > { %490 = vmatpush1.bf16.msra.mxu0 %v2776_v8  ;;  %563 = vmatpush1.bf16.msra.mxu1 %v2777_v9  ;;  %v3505_v21 = vld [vmem:[#allocation10 + $0x4c] ss:$16 sps:$4 sm:$0xff]   ;;  %v3511_v23 = vld [vmem:[#allocation10 + $0x48] ss:$16 sps:$4 sm:$0xff]   ;;  %v3515_v24 = vld [vmem:[#allocation10 + $0x64] ss:$16 sps:$4 sm:$0xff]  }
  0x98   : > { %870 = vmatprep.subr.bf16.mxu0 %v3478_v12  ;;  %913 = vmatprep.subr.bf16.mxu1 %v3482_v14  ;;  %v3517_v25 = vld [vmem:[#allocation10 + $0x6c] ss:$16 sps:$4 sm:$0xff]   ;;  %v3521_v26 = vld [vmem:[#allocation10 + $0x60] ss:$16 sps:$4 sm:$0xff]   ;;  %v3525_v27 = vld [vmem:[#allocation10 + $0x68] ss:$16 sps:$4 sm:$0xff]  }
  0x99   : > { %v3529_v28 = vld [vmem:[#allocation10 + $0x84] ss:$16 sps:$4 sm:$0xff]   ;;  %v3531_v29 = vld [vmem:[#allocation10 + $0x8c] ss:$16 sps:$4 sm:$0xff]   ;;  %v3536_v31 = vld [vmem:[#allocation10 + $0x80] ss:$16 sps:$4 sm:$0xff]  }
  0x9a   : > { %2358 = vmatmul.mubr.msk.bf16.vlgmr.msra.gmra.mrb[0].mxu0 %vm474_vm0, %v2778_v10  ;;  %2362 = vmatmul.mubr.msk.bf16.vlgmr.msra.gmra.mrb[0].mxu1 %vm474_vm0, %v2778_v10  ;;  %v2804_v30 = vld [vmem:[%s3454_s6 + $0x10] sm:$0xff]   ;;  %v3538_v32 = vld [vmem:[#allocation10 + $0x88] ss:$16 sps:$4 sm:$0xff]   ;;  %v3546_v34 = vld [vmem:[#allocation10 + $0xac] ss:$16 sps:$4 sm:$0xff]   ;;  %v400_v53 = vsub.s32 1, %v395_v50 }
  0x9b   : > { %871 = vmatpush1.bf16.msra.mxu0 %v3476_v11  ;;  %914 = vmatpush1.bf16.msra.mxu1 %v3480_v13  ;;  %v3542_v33 = vld [vmem:[#allocation10 + $0xa4] ss:$16 sps:$4 sm:$0xff]   ;;  %v3550_v35 = vld [vmem:[#allocation10 + $0xa0] ss:$16 sps:$4 sm:$0xff]   ;;  %v3552_v36 = vld [vmem:[#allocation10 + $0xa8] ss:$16 sps:$4 sm:$0xff]  }
  0x9c   : > { %872 = vmatprep.subr.bf16.mxu0 %v3486_v15  ;;  %915 = vmatprep.subr.bf16.mxu1 %v3492_v17  ;;  %v3556_v37 = vld [vmem:[#allocation10 + $0xc4] ss:$16 sps:$4 sm:$0xff]   ;;  %v3560_v38 = vld [vmem:[#allocation10 + $0xcc] ss:$16 sps:$4 sm:$0xff]   ;;  %v3567_v40 = vld [vmem:[#allocation10 + $0xc0] ss:$16 sps:$4 sm:$0xff]  }
  0x9d   : > { %529 = vmatprep.mubr.bf16.mxu0 %v3185_v3  ;;  %602 = vmatprep.mubr.bf16.mxu1 %v3185_v3  ;;  %v2817_v39 = vld [vmem:[%s3454_s6 + $0x18] sm:$0xff]   ;;  %v3573_v42 = vld [vmem:[#allocation10 + $0xe4] ss:$16 sps:$4 sm:$0xff]   ;;  %v3579_v44 = vld [vmem:[#allocation10 + $0xe0] ss:$16 sps:$4 sm:$0xff]   ;;  %v404_v57 = vsub.s32 2, %v395_v50 }
  0x9e   : > { %v3569_v41 = vld [vmem:[#allocation10 + $0xc8] ss:$16 sps:$4 sm:$0xff]   ;;  %v3575_v43 = vld [vmem:[#allocation10 + $0xec] ss:$16 sps:$4 sm:$0xff]   ;;  %v665_v46 = vld [vmem:[#allocation2] sm:$0xff]  ;;  %v408_v2 = vsub.s32 3, %v395_v50 }
  0x9f   : > { %873 = vmatpush1.bf16.msra.mxu0 %v3490_v16  ;;  %916 = vmatpush1.bf16.msra.mxu1 %v3496_v18  ;;  %v3583_v45 = vld [vmem:[#allocation10 + $0xe8] ss:$16 sps:$4 sm:$0xff]   ;;  %v392_v52 = vld [vmem:[%s3912_s3] sm:$0xf]  ;;  %p2524_p5 = scmp.ne.s32.totalorder %s3156_s27, 1 }
  0xa0   : > { %874 = vmatprep.subr.bf16.mxu0 %v3500_v19  ;;  %917 = vmatprep.subr.bf16.mxu1 %v3505_v21  ;;  %v666_v47 = vld [vmem:[#allocation2 + $0x8] sm:$0xff]  ;;  %v3630_v54 = vrot.slane %v392_v52, %v396_v51  ;;  %v3632_v55 = vrot.slane %v392_v52, %v400_v53  ;;  %v3637_v7 = vrot.slane %v392_v52, %v404_v57 }
  0xa1   : > { %v677_v48 = vpack.c.bf16 %v666_v47, %v665_v46 }
  0xa2   : > { %2359 = vmatmul.mubr.msk.bf16.gmra.mrb[4].mxu0 %vm474_vm0, %v2791_v20  ;;  %2363 = vmatmul.mubr.msk.bf16.gmra.mrb[4].mxu1 %vm474_vm0, %v2791_v20 }
  0xa3   : > { %875 = vmatpush1.bf16.msra.mxu0 %v3509_v22  ;;  %918 = vmatpush1.bf16.msra.mxu1 %v3511_v23 }
  0xa4   : > { %876 = vmatprep.subr.bf16.mxu0 %v3515_v24  ;;  %919 = vmatprep.subr.bf16.mxu1 %v3517_v25 }
  0xa5   : > { %539 = vmatprep.mubr.bf16.mxu0 %v3185_v3  ;;  %612 = vmatprep.mubr.bf16.mxu1 %v3185_v3 }
  0xa7   : > { %877 = vmatpush1.bf16.msra.mxu0 %v3521_v26  ;;  %920 = vmatpush1.bf16.msra.mxu1 %v3525_v27 }
  0xa8   : > { %878 = vmatprep.subr.bf16.mxu0 %v3529_v28  ;;  %921 = vmatprep.subr.bf16.mxu1 %v3531_v29 }
  0xaa   : > { %2360 = vmatmul.mubr.msk.bf16.gmra.mrb[8].mxu0 %vm474_vm0, %v2804_v30  ;;  %2364 = vmatmul.mubr.msk.bf16.gmra.mrb[8].mxu1 %vm474_vm0, %v2804_v30  ;;  %v3640_v30 = vrot.slane %v392_v52, %v408_v2 }
  0xab   : > { %879 = vmatpush1.bf16.msra.mxu0 %v3536_v31  ;;  %922 = vmatpush1.bf16.msra.mxu1 %v3538_v32 }
  0xac   : > { %880 = vmatprep.subr.bf16.mxu0 %v3542_v33  ;;  %923 = vmatprep.subr.bf16.mxu1 %v3546_v34 }
  0xad   : > { %549 = vmatprep.mubr.bf16.mxu0 %v3185_v3  ;;  %622 = vmatprep.mubr.bf16.mxu1 %v3185_v3 }
  0xaf   : > { %881 = vmatpush1.bf16.msra.mxu0 %v3550_v35  ;;  %924 = vmatpush1.bf16.msra.mxu1 %v3552_v36 }
  0xb0   : > { %882 = vmatprep.subr.bf16.mxu0 %v3556_v37  ;;  %925 = vmatprep.subr.bf16.mxu1 %v3560_v38 }
  0xb2   : > { %2361 = vmatmul.mubr.msk.bf16.gmra.mrb[12].mxu0 %vm474_vm0, %v2817_v39  ;;  %2365 = vmatmul.mubr.msk.bf16.gmra.mrb[12].mxu1 %vm474_vm0, %v2817_v39 }
  0xb3   : > { %883 = vmatpush1.bf16.msra.mxu0 %v3567_v40  ;;  %926 = vmatpush1.bf16.msra.mxu1 %v3569_v41 }
  0xb4   : > { %884 = vmatprep.subr.bf16.mxu0 %v3573_v42  ;;  %927 = vmatprep.subr.bf16.mxu1 %v3575_v43 }
  0xb5   : > { %902 = vmatprep.mubr.bf16.mxu0 %v3185_v3  ;;  %945 = vmatprep.mubr.bf16.mxu1 %v3185_v3 }
  0xb7   : > { %885 = vmatpush1.bf16.msra.mxu0 %v3579_v44  ;;  %928 = vmatpush1.bf16.msra.mxu1 %v3583_v45 }
  0xb8   : > { %1216 = vmatprep.subr.bf16.mxu0 %v3478_v12  ;;  %1259 = vmatprep.subr.bf16.mxu1 %v3482_v14 }
  0xba   : > { %903 = vmatmul.mubr.bf16.vlgmr.msra.gmra.mrb[0].mxu0 %v677_v48  ;;  %946 = vmatmul.mubr.bf16.vlgmr.msra.gmra.mrb[0].mxu1 %v677_v48 }
  0xbb   : > { %1217 = vmatpush1.bf16.msra.mxu0 %v3476_v11  ;;  %1260 = vmatpush1.bf16.msra.mxu1 %v3480_v13 }
  0xbc   : > { %1218 = vmatprep.subr.bf16.mxu0 %v3486_v15  ;;  %1261 = vmatprep.subr.bf16.mxu1 %v3492_v17 }
  0xbd   : > { %1248 = vmatprep.mubr.bf16.mxu0 %v3185_v3  ;;  %1291 = vmatprep.mubr.bf16.mxu1 %v3185_v3 }
  0xbf   : > { %1219 = vmatpush1.bf16.msra.mxu0 %v3490_v16  ;;  %1262 = vmatpush1.bf16.msra.mxu1 %v3496_v18 }
  0xc0   : > { %1220 = vmatprep.subr.bf16.mxu0 %v3500_v19  ;;  %1263 = vmatprep.subr.bf16.mxu1 %v3505_v21 }
  0xc3   : > { %1221 = vmatpush1.bf16.msra.mxu0 %v3509_v22  ;;  %1264 = vmatpush1.bf16.msra.mxu1 %v3511_v23 }
  0xc4   : > { %1222 = vmatprep.subr.bf16.mxu0 %v3515_v24  ;;  %1265 = vmatprep.subr.bf16.mxu1 %v3517_v25 }
  0xc7   : > { %1223 = vmatpush1.bf16.msra.mxu0 %v3521_v26  ;;  %1266 = vmatpush1.bf16.msra.mxu1 %v3525_v27 }
  0xc8   : > { %1224 = vmatprep.subr.bf16.mxu0 %v3529_v28  ;;  %1267 = vmatprep.subr.bf16.mxu1 %v3531_v29 }
  0xcb   : > { %1225 = vmatpush1.bf16.msra.mxu0 %v3536_v31  ;;  %1268 = vmatpush1.bf16.msra.mxu1 %v3538_v32 }
  0xcc   : > { %1226 = vmatprep.subr.bf16.mxu0 %v3542_v33  ;;  %1269 = vmatprep.subr.bf16.mxu1 %v3546_v34 }
  0xcf   : > { %1227 = vmatpush1.bf16.msra.mxu0 %v3550_v35  ;;  %1270 = vmatpush1.bf16.msra.mxu1 %v3552_v36 }
  0xd0   : > { %1228 = vmatprep.subr.bf16.mxu0 %v3556_v37  ;;  %1271 = vmatprep.subr.bf16.mxu1 %v3560_v38 }
  0xd3   : > { %1229 = vmatpush1.bf16.msra.mxu0 %v3567_v40  ;;  %1272 = vmatpush1.bf16.msra.mxu1 %v3569_v41 }
  0xd4   : > { %1230 = vmatprep.subr.bf16.mxu0 %v3573_v42  ;;  %1273 = vmatprep.subr.bf16.mxu1 %v3575_v43 }
  0xd7   : > { %1231 = vmatpush1.bf16.msra.mxu0 %v3579_v44  ;;  %1274 = vmatpush1.bf16.msra.mxu1 %v3583_v45 }
  0xd8   : > { %1563 = vmatprep.subr.bf16.mxu0 %v3478_v12  ;;  %1606 = vmatprep.subr.bf16.mxu1 %v3482_v14 }
 0x18d   : > { %v904_v56 = vpop.f32.mrb[0].mxu0  ;;  %v947_v58 = vpop.f32.mrb[0].mxu1 }
 0x18e   : > { %v2542_v59 = vadd.f32 %v904_v56, %v3630_v54  ;;  %v906_v60 = vpop.f32.mrb[1].mxu0  ;;  %v949_v61 = vpop.f32.mrb[1].mxu1  ;;  %v2558_v39 = vadd.f32 %v947_v58, %v3637_v7 }
 0x18f   : > { %v2543_v62 = vadd.f32 %v906_v60, %v3632_v55  ;;  %v908_v63 = vpop.f32.mrb[2].mxu0  ;;  %v951_v0 = vpop.f32.mrb[2].mxu1  ;;  %v2559_v47 = vadd.f32 %v949_v61, %v3640_v30 }
 0x190   : > { %v2398_v1 = vmul.f32 -1.442695, %v2542_v59  ;;  %v2544_v4 = vadd.f32 %v908_v63, %v3630_v54  ;;  %v910_v5 = vpop.f32.mrb[3].mxu0  ;;  %v953_v6 = vpop.f32.mrb[3].mxu1  ;;  %v2560_v46 = vadd.f32 %v951_v0, %v3637_v7  ;;  %v2400_v48 = vmul.f32 -1.442695, %v2558_v39 }
 0x191   : > { %v2399_v8 = vmul.f32 -1.442695, %v2543_v62  ;;  %v2545_v9 = vadd.f32 %v910_v5, %v3632_v55  ;;  %v2561_v51 = vadd.f32 %v953_v6, %v3640_v30 }
 0x192   : > { %2830 = vpow2.f32 %v2398_v1  ;;  %v2401_v10 = vmul.f32 -1.442695, %v2544_v4  ;;  %v2403_v49 = vmul.f32 -1.442695, %v2560_v46  ;;  %v667_v1 = vld [vmem:[#allocation3] sm:$0xff] }
 0x193   : > { %v2402_v20 = vmul.f32 -1.442695, %v2545_v9  ;;  %2832 = vpow2.f32 %v2399_v8 }
 0x194   : > { %2834 = vpow2.f32 %v2401_v10  ;;  %v668_v10 = vld [vmem:[#allocation3 + $0x8] sm:$0xff] }
 0x195   : > { %2836 = vpow2.f32 %v2402_v20 }
 0x196   : > { %2838 = vtanh.f32 %v2559_v47 }
 0x197   : > { %2840 = vpow2.f32 %v2400_v48 }
 0x198   : > { %2842 = vpow2.f32 %v2403_v49 }
 0x19c   : > { %v2831_v50 = vpop.eup %2830 }
 0x19d   : > { %v982_v53 = vadd.f32 1.0, %v2831_v50  ;;  %v2833_v56 = vpop.eup %2832 }
 0x19e   : > { %v2835_v52 = vpop.eup %2834  ;;  %v983_v57 = vadd.f32 1.0, %v2833_v56 }
 0x19f   : > { %2844 = vrcp.f32 %v982_v53  ;;  %v985_v58 = vadd.f32 1.0, %v2835_v52  ;;  %v2837_v59 = vpop.eup %2836 }
 0x1a0   : > { %2846 = vtanh.f32 %v2561_v51  ;;  %v986_v60 = vadd.f32 1.0, %v2837_v59  ;;  %v2839_v61 = vpop.eup %2838 }
 0x1a1   : > { %2848 = vrcp.f32 %v983_v57  ;;  %v2841_v62 = vpop.eup %2840 }
 0x1a2   : > { %2850 = vrcp.f32 %v985_v58  ;;  %v2843_v63 = vpop.eup %2842  ;;  %v984_v6 = vadd.f32 1.0, %v2841_v62 }
 0x1a3   : > { %2852 = vrcp.f32 %v986_v60  ;;  %v987_v47 = vadd.f32 1.0, %v2843_v63 }
 0x1a4   : > { %2854 = vrcp.f32 %v984_v6 }
 0x1a9   : > { %v2845_v0 = vpop.eup %2844 }
 0x1aa   : > { %v2847_v2 = vpop.eup %2846  ;;  %v1004_v4 = vmul.f32 %v2845_v0, %v2839_v61 }
 0x1ab   : > { %v2849_v5 = vpop.eup %2848 }
 0x1ac   : > { %v2851_v8 = vpop.eup %2850  ;;  %v1002_v9 = vmul.f32 %v2849_v5, %v667_v1 }
 0x1ad   : > { %v1005_v20 = vmul.f32 %v2851_v8, %v2847_v2  ;;  %v2853_v39 = vpop.eup %2852 }
 0x1ae   : > { %v3646_v46 = vadd.f32 %v1004_v4, %v1002_v9  ;;  %v1003_v48 = vmul.f32 %v2853_v39, %v668_v10  ;;  %v2855_v50 = vpop.eup %2854 }
 0x1b0   : > { %2856 = vtanh.f32 %v3646_v46  ;;  %v3649_v49 = vadd.f32 %v1005_v20, %v1003_v48 }
 0x1b1   : > { %2858 = vrcp.f32 %v987_v47 }
 0x1b2   : > { %2860 = vtanh.f32 %v3649_v49 }
 0x1ba   : > { %v2857_v51 = vpop.eup %2856 }
 0x1bb   : > { %v1010_v53 = vmul.f32 %v2857_v51, %v2855_v50  ;;  %v2859_v56 = vpop.eup %2858 }
 0x1bc   : > { %v2861_v52 = vpop.eup %2860 }
 0x1bd   : > { %1012 = vst [vmem:[%s3466_s10] sm:$0xff] %v1010_v53  ;;  %v1011_v57 = vmul.f32 %v2861_v52, %v2859_v56 }
 0x1bf   : > { %1013 = vst [vmem:[%s3466_s10 + $0x8] sm:$0xff] %v1011_v57  ;;  %v1023_v58 = vpack.c.bf16 %v1011_v57, %v1010_v53 }
 0x1c1   : > { %1249 = vmatmul.mubr.bf16.vlgmr.msra.gmra.mrb[4].mxu0 %v1023_v58  ;;  %1292 = vmatmul.mubr.bf16.vlgmr.msra.gmra.mrb[4].mxu1 %v1023_v58 }
 0x1c2   : > { %1564 = vmatpush1.bf16.msra.mxu0 %v3476_v11  ;;  %1607 = vmatpush1.bf16.msra.mxu1 %v3480_v13 }
 0x1c3   : > { %1565 = vmatprep.subr.bf16.mxu0 %v3486_v15  ;;  %1608 = vmatprep.subr.bf16.mxu1 %v3492_v17 }
 0x1c4   : > { %1595 = vmatprep.mubr.bf16.mxu0 %v3185_v3  ;;  %1638 = vmatprep.mubr.bf16.mxu1 %v3185_v3 }
 0x1c6   : > { %1566 = vmatpush1.bf16.msra.mxu0 %v3490_v16  ;;  %1609 = vmatpush1.bf16.msra.mxu1 %v3496_v18 }
 0x1c7   : > { %1567 = vmatprep.subr.bf16.mxu0 %v3500_v19  ;;  %1610 = vmatprep.subr.bf16.mxu1 %v3505_v21 }
 0x1ca   : > { %1568 = vmatpush1.bf16.msra.mxu0 %v3509_v22  ;;  %1611 = vmatpush1.bf16.msra.mxu1 %v3511_v23 }
 0x1cb   : > { %1569 = vmatprep.subr.bf16.mxu0 %v3515_v24  ;;  %1612 = vmatprep.subr.bf16.mxu1 %v3517_v25 }
 0x1ce   : > { %1570 = vmatpush1.bf16.msra.mxu0 %v3521_v26  ;;  %1613 = vmatpush1.bf16.msra.mxu1 %v3525_v27 }
 0x1cf   : > { %1571 = vmatprep.subr.bf16.mxu0 %v3529_v28  ;;  %1614 = vmatprep.subr.bf16.mxu1 %v3531_v29 }
 0x1d2   : > { %1572 = vmatpush1.bf16.msra.mxu0 %v3536_v31  ;;  %1615 = vmatpush1.bf16.msra.mxu1 %v3538_v32 }
 0x1d3   : > { %1573 = vmatprep.subr.bf16.mxu0 %v3542_v33  ;;  %1616 = vmatprep.subr.bf16.mxu1 %v3546_v34 }
 0x1d6   : > { %1574 = vmatpush1.bf16.msra.mxu0 %v3550_v35  ;;  %1617 = vmatpush1.bf16.msra.mxu1 %v3552_v36 }
 0x1d7   : > { %1575 = vmatprep.subr.bf16.mxu0 %v3556_v37  ;;  %1618 = vmatprep.subr.bf16.mxu1 %v3560_v38 }
 0x1da   : > { %1576 = vmatpush1.bf16.msra.mxu0 %v3567_v40  ;;  %1619 = vmatpush1.bf16.msra.mxu1 %v3569_v41 }
 0x1db   : > { %1577 = vmatprep.subr.bf16.mxu0 %v3573_v42  ;;  %1620 = vmatprep.subr.bf16.mxu1 %v3575_v43 }
 0x1de   : > { %1578 = vmatpush1.bf16.msra.mxu0 %v3579_v44  ;;  %1621 = vmatpush1.bf16.msra.mxu1 %v3583_v45 }
 0x1df   : > { %1910 = vmatprep.subr.bf16.mxu0 %v3478_v12  ;;  %1953 = vmatprep.subr.bf16.mxu1 %v3482_v14 }
 0x294   : > { %v1250_v59 = vpop.f32.mrb[4].mxu0  ;;  %v1293_v60 = vpop.f32.mrb[4].mxu1 }
 0x295   : > { %v2546_v61 = vadd.f32 %v1250_v59, %v3630_v54  ;;  %v1252_v62 = vpop.f32.mrb[5].mxu0  ;;  %v1295_v63 = vpop.f32.mrb[5].mxu1  ;;  %v2562_v20 = vadd.f32 %v1293_v60, %v3637_v7 }
 0x296   : > { %v2547_v0 = vadd.f32 %v1252_v62, %v3632_v55  ;;  %v1254_v1 = vpop.f32.mrb[6].mxu0  ;;  %v1297_v2 = vpop.f32.mrb[6].mxu1  ;;  %v2563_v47 = vadd.f32 %v1295_v63, %v3640_v30 }
 0x297   : > { %v2436_v4 = vmul.f32 -1.442695, %v2546_v61  ;;  %v2548_v5 = vadd.f32 %v1254_v1, %v3630_v54  ;;  %v1256_v6 = vpop.f32.mrb[7].mxu0  ;;  %v1299_v8 = vpop.f32.mrb[7].mxu1  ;;  %v2564_v39 = vadd.f32 %v1297_v2, %v3637_v7  ;;  %v2438_v48 = vmul.f32 -1.442695, %v2562_v20 }
 0x298   : > { %v2437_v9 = vmul.f32 -1.442695, %v2547_v0  ;;  %v2549_v12 = vadd.f32 %v1256_v6, %v3632_v55  ;;  %v2565_v53 = vadd.f32 %v1299_v8, %v3640_v30 }
 0x299   : > { %2862 = vpow2.f32 %v2436_v4  ;;  %v2439_v14 = vmul.f32 -1.442695, %v2548_v5  ;;  %v2441_v50 = vmul.f32 -1.442695, %v2564_v39 }
 0x29a   : > { %v2440_v10 = vmul.f32 -1.442695, %v2549_v12  ;;  %2864 = vpow2.f32 %v2437_v9 }
 0x29b   : > { %2866 = vpow2.f32 %v2439_v14 }
 0x29c   : > { %2868 = vpow2.f32 %v2440_v10 }
 0x29d   : > { %2870 = vtanh.f32 %v2563_v47 }
 0x29e   : > { %2872 = vpow2.f32 %v2438_v48 }
 0x29f   : > { %2874 = vpow2.f32 %v2441_v50 }
 0x2a3   : > { %v2863_v51 = vpop.eup %2862 }
 0x2a4   : > { %v1328_v56 = vadd.f32 1.0, %v2863_v51  ;;  %v2865_v52 = vpop.eup %2864 }
 0x2a5   : > { %v2867_v57 = vpop.eup %2866  ;;  %v1329_v58 = vadd.f32 1.0, %v2865_v52 }
 0x2a6   : > { %2876 = vrcp.f32 %v1328_v56  ;;  %v1331_v59 = vadd.f32 1.0, %v2867_v57  ;;  %v2869_v60 = vpop.eup %2868 }
 0x2a7   : > { %2878 = vtanh.f32 %v2565_v53  ;;  %v1332_v61 = vadd.f32 1.0, %v2869_v60  ;;  %v2871_v62 = vpop.eup %2870 }
 0x2a8   : > { %2880 = vrcp.f32 %v1329_v58  ;;  %v2873_v63 = vpop.eup %2872 }
 0x2a9   : > { %2882 = vrcp.f32 %v1331_v59  ;;  %v2875_v0 = vpop.eup %2874  ;;  %v1330_v6 = vadd.f32 1.0, %v2873_v63 }
 0x2aa   : > { %2884 = vrcp.f32 %v1332_v61  ;;  %v1333_v20 = vadd.f32 1.0, %v2875_v0 }
 0x2ab   : > { %2886 = vrcp.f32 %v1330_v6 }
 0x2b0   : > { %v2877_v1 = vpop.eup %2876 }
 0x2b1   : > { %v2879_v2 = vpop.eup %2878  ;;  %v1350_v4 = vmul.f32 %v2877_v1, %v2871_v62 }
 0x2b2   : > { %v2881_v5 = vpop.eup %2880 }
 0x2b3   : > { %v2883_v8 = vpop.eup %2882  ;;  %v1348_v9 = vmul.f32 %v2881_v5, %v3646_v46 }
 0x2b4   : > { %v1351_v12 = vmul.f32 %v2883_v8, %v2879_v2  ;;  %v2885_v14 = vpop.eup %2884 }
 0x2b5   : > { %v3697_v10 = vadd.f32 %v1350_v4, %v1348_v9  ;;  %v1349_v39 = vmul.f32 %v2885_v14, %v3649_v49  ;;  %v2887_v48 = vpop.eup %2886 }
 0x2b7   : > { %2888 = vtanh.f32 %v3697_v10  ;;  %v3701_v47 = vadd.f32 %v1351_v12, %v1349_v39 }
 0x2b8   : > { %2890 = vrcp.f32 %v1333_v20 }
 0x2b9   : > { %2892 = vtanh.f32 %v3701_v47 }
 0x2c1   : > { %v2889_v50 = vpop.eup %2888 }
 0x2c2   : > { %v1356_v46 = vmul.f32 %v2889_v50, %v2887_v48  ;;  %v2891_v51 = vpop.eup %2890 }
 0x2c3   : > { %v2893_v53 = vpop.eup %2892 }
 0x2c4   : > { %2442 = vst [vmem:[%s3466_s10 + $0x10] sm:$0xff] %v1356_v46  ;;  %v1357_v56 = vmul.f32 %v2893_v53, %v2891_v51 }
 0x2c6   : > { %2443 = vst [vmem:[%s3466_s10 + $0x18] sm:$0xff] %v1357_v56  ;;  %v1370_v52 = vpack.c.bf16 %v1357_v56, %v1356_v46 }
 0x2c8   : > { %1596 = vmatmul.mubr.bf16.vlgmr.msra.gmra.mrb[8].mxu0 %v1370_v52  ;;  %1639 = vmatmul.mubr.bf16.vlgmr.msra.gmra.mrb[8].mxu1 %v1370_v52 }
 0x2c9   : > { %1911 = vmatpush1.bf16.msra.mxu0 %v3476_v11  ;;  %1954 = vmatpush1.bf16.msra.mxu1 %v3480_v13 }
 0x2ca   : > { %1912 = vmatprep.subr.bf16.mxu0 %v3486_v15  ;;  %1955 = vmatprep.subr.bf16.mxu1 %v3492_v17 }
 0x2cb   : > { %1942 = vmatprep.mubr.bf16.mxu0 %v3185_v3  ;;  %1985 = vmatprep.mubr.bf16.mxu1 %v3185_v3 }
 0x2cd   : > { %1913 = vmatpush1.bf16.msra.mxu0 %v3490_v16  ;;  %1956 = vmatpush1.bf16.msra.mxu1 %v3496_v18 }
 0x2ce   : > { %1914 = vmatprep.subr.bf16.mxu0 %v3500_v19  ;;  %1957 = vmatprep.subr.bf16.mxu1 %v3505_v21 }
 0x2d1   : > { %1915 = vmatpush1.bf16.msra.mxu0 %v3509_v22  ;;  %1958 = vmatpush1.bf16.msra.mxu1 %v3511_v23 }
 0x2d2   : > { %1916 = vmatprep.subr.bf16.mxu0 %v3515_v24  ;;  %1959 = vmatprep.subr.bf16.mxu1 %v3517_v25 }
 0x2d5   : > { %1917 = vmatpush1.bf16.msra.mxu0 %v3521_v26  ;;  %1960 = vmatpush1.bf16.msra.mxu1 %v3525_v27 }
 0x2d6   : > { %1918 = vmatprep.subr.bf16.mxu0 %v3529_v28  ;;  %1961 = vmatprep.subr.bf16.mxu1 %v3531_v29 }
 0x2d9   : > { %1919 = vmatpush1.bf16.msra.mxu0 %v3536_v31  ;;  %1962 = vmatpush1.bf16.msra.mxu1 %v3538_v32 }
 0x2da   : > { %1920 = vmatprep.subr.bf16.mxu0 %v3542_v33  ;;  %1963 = vmatprep.subr.bf16.mxu1 %v3546_v34 }
 0x2dd   : > { %1921 = vmatpush1.bf16.msra.mxu0 %v3550_v35  ;;  %1964 = vmatpush1.bf16.msra.mxu1 %v3552_v36 }
 0x2de   : > { %1922 = vmatprep.subr.bf16.mxu0 %v3556_v37  ;;  %1965 = vmatprep.subr.bf16.mxu1 %v3560_v38 }
 0x2e1   : > { %1923 = vmatpush1.bf16.msra.mxu0 %v3567_v40  ;;  %1966 = vmatpush1.bf16.msra.mxu1 %v3569_v41 }
 0x2e2   : > { %1924 = vmatprep.subr.bf16.mxu0 %v3573_v42  ;;  %1967 = vmatprep.subr.bf16.mxu1 %v3575_v43 }
 0x2e5   : > { %1925 = vmatpush1.bf16.msra.mxu0 %v3579_v44  ;;  %1968 = vmatpush1.bf16.msra.mxu1 %v3583_v45 }
 0x39b   : > { %v1597_v3 = vpop.f32.mrb[8].mxu0  ;;  %v1640_v11 = vpop.f32.mrb[8].mxu1 }
 0x39c   : > { %v2550_v13 = vadd.f32 %v1597_v3, %v3630_v54  ;;  %v1599_v15 = vpop.f32.mrb[9].mxu0  ;;  %v1642_v16 = vpop.f32.mrb[9].mxu1  ;;  %v2566_v29 = vadd.f32 %v1640_v11, %v3637_v7 }
 0x39d   : > { %v2551_v17 = vadd.f32 %v1599_v15, %v3632_v55  ;;  %v1601_v18 = vpop.f32.mrb[10].mxu0  ;;  %v1644_v19 = vpop.f32.mrb[10].mxu1  ;;  %v2567_v32 = vadd.f32 %v1642_v16, %v3640_v30 }
 0x39e   : > { %v2476_v21 = vmul.f32 -1.442695, %v2550_v13  ;;  %v2552_v22 = vadd.f32 %v1601_v18, %v3630_v54  ;;  %v1603_v23 = vpop.f32.mrb[11].mxu0  ;;  %v1646_v24 = vpop.f32.mrb[11].mxu1  ;;  %v2568_v31 = vadd.f32 %v1644_v19, %v3637_v7  ;;  %v2478_v33 = vmul.f32 -1.442695, %v2566_v29 }
 0x39f   : > { %v2477_v25 = vmul.f32 -1.442695, %v2551_v17  ;;  %v2553_v26 = vadd.f32 %v1603_v23, %v3632_v55  ;;  %v2569_v36 = vadd.f32 %v1646_v24, %v3640_v30 }
 0x3a0   : > { %2894 = vpow2.f32 %v2476_v21  ;;  %v2479_v27 = vmul.f32 -1.442695, %v2552_v22  ;;  %v2481_v34 = vmul.f32 -1.442695, %v2568_v31 }
 0x3a1   : > { %v2480_v28 = vmul.f32 -1.442695, %v2553_v26  ;;  %2896 = vpow2.f32 %v2477_v25 }
 0x3a2   : > { %2898 = vpow2.f32 %v2479_v27 }
 0x3a3   : > { %2900 = vpow2.f32 %v2480_v28 }
 0x3a4   : > { %2902 = vtanh.f32 %v2567_v32 }
 0x3a5   : > { %2904 = vpow2.f32 %v2478_v33 }
 0x3a6   : > { %2906 = vpow2.f32 %v2481_v34 }
 0x3aa   : > { %v2895_v35 = vpop.eup %2894 }
 0x3ab   : > { %v1675_v37 = vadd.f32 1.0, %v2895_v35  ;;  %v2897_v38 = vpop.eup %2896 }
 0x3ac   : > { %v2899_v40 = vpop.eup %2898  ;;  %v1676_v41 = vadd.f32 1.0, %v2897_v38 }
 0x3ad   : > { %2908 = vrcp.f32 %v1675_v37  ;;  %v1678_v42 = vadd.f32 1.0, %v2899_v40  ;;  %v2901_v43 = vpop.eup %2900 }
 0x3ae   : > { %2910 = vtanh.f32 %v2569_v36  ;;  %v1679_v44 = vadd.f32 1.0, %v2901_v43  ;;  %v2903_v45 = vpop.eup %2902 }
 0x3af   : > { %2912 = vrcp.f32 %v1676_v41  ;;  %v2905_v49 = vpop.eup %2904 }
 0x3b0   : > { %2914 = vrcp.f32 %v1678_v42  ;;  %v2907_v57 = vpop.eup %2906  ;;  %v1677_v62 = vadd.f32 1.0, %v2905_v49 }
 0x3b1   : > { %2916 = vrcp.f32 %v1679_v44  ;;  %v1680_v5 = vadd.f32 1.0, %v2907_v57 }
 0x3b2   : > { %2918 = vrcp.f32 %v1677_v62 }
 0x3b7   : > { %v2909_v58 = vpop.eup %2908 }
 0x3b8   : > { %v2911_v59 = vpop.eup %2910  ;;  %v1697_v60 = vmul.f32 %v2909_v58, %v2903_v45 }
 0x3b9   : > { %v2913_v61 = vpop.eup %2912 }
 0x3ba   : > { %v2915_v63 = vpop.eup %2914  ;;  %v1695_v0 = vmul.f32 %v2913_v61, %v3697_v10 }
 0x3bb   : > { %v1698_v1 = vmul.f32 %v2915_v63, %v2911_v59  ;;  %v2917_v2 = vpop.eup %2916 }
 0x3bc   : > { %v3747_v4 = vadd.f32 %v1697_v60, %v1695_v0  ;;  %v1696_v6 = vmul.f32 %v2917_v2, %v3701_v47  ;;  %v2919_v9 = vpop.eup %2918 }
 0x3be   : > { %2920 = vtanh.f32 %v3747_v4  ;;  %v3751_v8 = vadd.f32 %v1698_v1, %v1696_v6 }
 0x3bf   : > { %2922 = vrcp.f32 %v1680_v5 }
 0x3c0   : > { %2924 = vtanh.f32 %v3751_v8 }
 0x3c8   : > { %v2921_v12 = vpop.eup %2920 }
 0x3c9   : > { %v1703_v14 = vmul.f32 %v2921_v12, %v2919_v9  ;;  %v2923_v10 = vpop.eup %2922 }
 0x3ca   : > { %v2925_v20 = vpop.eup %2924 }
 0x3cb   : > { %2482 = vst [vmem:[%s3466_s10 + $0x20] sm:$0xff] %v1703_v14  ;;  %v1704_v39 = vmul.f32 %v2925_v20, %v2923_v10 }
 0x3cd   : > { %2483 = vst [vmem:[%s3466_s10 + $0x28] sm:$0xff] %v1704_v39  ;;  %v1717_v48 = vpack.c.bf16 %v1704_v39, %v1703_v14 }
 0x3cf   : > { %1943 = vmatmul.mubr.bf16.vlgmr.msra.gmra.mrb[12].mxu0 %v1717_v48  ;;  %1986 = vmatmul.mubr.bf16.vlgmr.msra.gmra.mrb[12].mxu1 %v1717_v48 }
 0x4a2   : > { %v1944_v50 = vpop.f32.mrb[12].mxu0  ;;  %v1987_v47 = vpop.f32.mrb[12].mxu1 }
 0x4a3   : > { %v2554_v46 = vadd.f32 %v1944_v50, %v3630_v54  ;;  %v1946_v51 = vpop.f32.mrb[13].mxu0  ;;  %v1989_v53 = vpop.f32.mrb[13].mxu1  ;;  %v2570_v22 = vadd.f32 %v1987_v47, %v3637_v7 }
 0x4a4   : > { %v2555_v56 = vadd.f32 %v1946_v51, %v3632_v55  ;;  %v1948_v52 = vpop.f32.mrb[14].mxu0  ;;  %v1991_v3 = vpop.f32.mrb[14].mxu1  ;;  %v2571_v24 = vadd.f32 %v1989_v53, %v3640_v30 }
 0x4a5   : > { %v2516_v11 = vmul.f32 -1.442695, %v2554_v46  ;;  %v2556_v13 = vadd.f32 %v1948_v52, %v3630_v54  ;;  %v1950_v15 = vpop.f32.mrb[15].mxu0  ;;  %v1993_v16 = vpop.f32.mrb[15].mxu1  ;;  %v2572_v23 = vadd.f32 %v1991_v3, %v3637_v7  ;;  %v2518_v25 = vmul.f32 -1.442695, %v2570_v22 }
 0x4a6   : > { %v2517_v17 = vmul.f32 -1.442695, %v2555_v56  ;;  %v2557_v18 = vadd.f32 %v1950_v15, %v3632_v55  ;;  %v2573_v27 = vadd.f32 %v1993_v16, %v3640_v30 }
 0x4a7   : > { %2926 = vpow2.f32 %v2516_v11  ;;  %v2519_v19 = vmul.f32 -1.442695, %v2556_v13  ;;  %v2521_v26 = vmul.f32 -1.442695, %v2572_v23 }
 0x4a8   : > { %v2520_v21 = vmul.f32 -1.442695, %v2557_v18  ;;  %2928 = vpow2.f32 %v2517_v17 }
 0x4a9   : > { %2930 = vpow2.f32 %v2519_v19 }
 0x4aa   : > { %2932 = vpow2.f32 %v2520_v21 }
 0x4ab   : > { %2934 = vtanh.f32 %v2571_v24 }
 0x4ac   : > { %2936 = vpow2.f32 %v2518_v25 }
 0x4ad   : > { %2938 = vpow2.f32 %v2521_v26 }
 0x4b1   : > { %v2927_v54 = vpop.eup %2926 }
 0x4b2   : > { %v2022_v28 = vadd.f32 1.0, %v2927_v54  ;;  %v2929_v55 = vpop.eup %2928 }
 0x4b3   : > { %v2931_v29 = vpop.eup %2930  ;;  %v2023_v31 = vadd.f32 1.0, %v2929_v55 }
 0x4b4   : > { %2940 = vrcp.f32 %v2022_v28  ;;  %v2025_v32 = vadd.f32 1.0, %v2931_v29  ;;  %v2933_v33 = vpop.eup %2932 }
 0x4b5   : > { %2942 = vtanh.f32 %v2573_v27  ;;  %v2026_v7 = vadd.f32 1.0, %v2933_v33  ;;  %v2935_v34 = vpop.eup %2934 }
 0x4b6   : > { %2944 = vrcp.f32 %v2023_v31  ;;  %v2937_v35 = vpop.eup %2936 }
 0x4b7   : > { %2946 = vrcp.f32 %v2025_v32  ;;  %v2939_v36 = vpop.eup %2938  ;;  %v2024_v41 = vadd.f32 1.0, %v2937_v35 }
 0x4b8   : > { %2948 = vrcp.f32 %v2026_v7  ;;  %v2027_v57 = vadd.f32 1.0, %v2939_v36 }
 0x4b9   : > { %2950 = vrcp.f32 %v2024_v41 }
 0x4be   : > { %v2941_v37 = vpop.eup %2940 }
 0x4bf   : > { %v2943_v38 = vpop.eup %2942  ;;  %v2044_v30 = vmul.f32 %v2941_v37, %v2935_v34 }
 0x4c0   : > { %v2945_v40 = vpop.eup %2944 }
 0x4c1   : > { %v2947_v42 = vpop.eup %2946  ;;  %v2042_v43 = vmul.f32 %v2945_v40, %v3747_v4 }
 0x4c2   : > { %v2045_v44 = vmul.f32 %v2947_v42, %v2943_v38  ;;  %v2949_v45 = vpop.eup %2948 }
 0x4c3   : > { %v2046_v49 = vadd.f32 %v2044_v30, %v2042_v43  ;;  %v2043_v58 = vmul.f32 %v2949_v45, %v3751_v8  ;;  %v2951_v60 = vpop.eup %2950 }
 0x4c5   : > { %2952 = vtanh.f32 %v2046_v49  ;;  %2057 = vst [vmem:[#allocation3] sm:$0xff] %v2046_v49  ;;  %v2047_v59 = vadd.f32 %v2045_v44, %v2043_v58  ;;  %2065 = vst [vmem:[%s3470_s23] sm:$0xff] (!%p2524_p5), %v2046_v49 }
 0x4c6   : > { %2954 = vrcp.f32 %v2027_v57 }
 0x4c7   : > { %2956 = vtanh.f32 %v2047_v59  ;;  %2058 = vst [vmem:[#allocation3 + $0x8] sm:$0xff] %v2047_v59  ;;  %2066 = vst [vmem:[%s3470_s23 + $0x8] sm:$0xff] (!%p2524_p5), %v2047_v59 }
 0x4ce   : > { %2062 = sbr.rel (%p2524_p5) target bundleno = 1238 (0x4d6), region = 56 }
 0x4cf   : > { %v2953_v61 = vpop.eup %2952 }
 0x4d0   : > { %v2050_v62 = vmul.f32 %v2953_v61, %v2951_v60  ;;  %v2955_v63 = vpop.eup %2954 }
 0x4d1   : > { %v2957_v0 = vpop.eup %2956 }
 0x4d2   : > { %2522 = vst [vmem:[%s3466_s10 + $0x30] sm:$0xff] %v2050_v62  ;;  %2055 = vst [vmem:[#allocation2] sm:$0xff] %v2050_v62  ;;  %v2051_v1 = vmul.f32 %v2957_v0, %v2955_v63 }
 0x4d3   : > { %2063 = vst [vmem:[%s3468_s18] sm:$0xff] (!%p2524_p5), %v2050_v62 }
 0x4d4   : > { %2523 = vst [vmem:[%s3466_s10 + $0x38] sm:$0xff] %v2051_v1  ;;  %2056 = vst [vmem:[#allocation2 + $0x8] sm:$0xff] %v2051_v1 }
 0x4d5   : > { %2064 = vst [vmem:[%s3468_s18 + $0x8] sm:$0xff] %v2051_v1 }
 0x4d6 PF: > { %s2072_s20 = sand.u32 1, %s3288_s8   ;;  %s2068_s13 = scalar_lea.sflag [#allocation7], %s3450_s4 }
 0x4d7   : > { %s3775_s24 = scalar_lea.sflag [#allocation13], %s2072_s20 }
 0x4d8   : > { %s2529_s11 = sshll.u32 %s3160_s28, 1  ;;  %s2539_s12 = sshll.u32 %s3156_s27, 4 }
 0x4d9   : > { %s2091_s19 = sadd.s32 %s2539_s12, %s2529_s11  ;;  %s2110_s5 = sshll.u32 %s3466_s10, 4  ;;  %s2111_s5 = int_to_ptr.vmem [resolvable:$true] %s2110_s5 }
 0x4da   : > { %s2531_s6 = sshll.u32 %s2091_s19, 7  ;;  %s3960_s14 = sld [smem:[#allocation33_spill]] }
 0x4db   : > { %s3186_s9 = smov 256   ;;  %p3961_p6 = scmp.ne.s32.totalorder %s3942_s16, 0 }
 0x4dc   : > { %s3187_s15 = smov 512   ;;  %s3188_s21 = smov 2  }
 0x4dd   : > { %2623 = sst [smem:[#allocation18]] (%p3961_p6), %s3186_s9  ;;  %s3189_s27 = smov 128  }
 0x4de   : > { %2624 = sst [smem:[#allocation18 + $0x1]] (%p3961_p6), %s3187_s15  ;;  %s3190_s10 = smov 8  }
 0x4df   : > { %2625 = sst [smem:[#allocation18 + $0x2]] (%p3961_p6), %s3188_s21  ;;  %s3191_s20 = smov [#allocation17]  }
 0x4e0   : > { %s2093_s17 = scalar_lea.hbm %s3960_s14, %s2531_s6  ;;  %2626 = sst [smem:[#allocation18 + $0x3]] (%p3961_p6), %s3189_s27 }
 0x4e1   : > { %2627 = sst [smem:[#allocation18 + $0x4]] (%p3961_p6), %s3189_s27  ;;  %s3192_s11 = smov 0  }
 0x4e2   : > { %2628 = sst [smem:[#allocation18 + $0x5]] (%p3961_p6), %s3190_s10  ;;  %s2540_s19 = sshll.u32 %s3160_s28, 8 }
 0x4e3   : > { %2629 = dma.general (%p3961_p6), %s2111_s5, 1024, %s2093_s17, %s2068_s13, %s3191_s20, [#allocation18], %s3192_s11, 0  }
 0x4e4   : > { %s3962_s12 = sld [smem:[#allocation31_spill]]  ;;  %s2139_s6 = sshll.u32 %s3468_s18, 4  ;;  %s3806_s6 = int_to_ptr.vmem [resolvable:$true] %s2139_s6 }
 0x4e5   : > { %s3963_s14 = sld [smem:[#allocation34_spill]]  ;;  %s3014_s15 = scalar_lea.vmem %s3806_s6, 256 }
 0x4e6   : > { %p3015_p0 = scmp.ne.s32.totalorder %s3806_s6, %s3014_s15  ;;  %s3193_s16 = smov [#allocation12]  }
 0x4e7   : > { %s3018_s13 = sshll.u32 %s3193_s16, 4  ;;  %s3019_s13 = int_to_ptr.vmem [resolvable:$false] %s3018_s13 }
 0x4e8   : > { %s3020_s18 = scalar_lea.vmem %s3019_s13, 512  ;;  %p3021_p11 = scmp.lt.s32.totalorder %s3806_s6, %s3019_s13 }
 0x4e9   : > { %p3022_p9 = scmp.lt.s32.totalorder %s3020_s18, %s3014_s15 }
 0x4ea   : > { %p3964_p2 = scmp.ne.s32.totalorder %s3962_s12, 0 }
 0x4eb   : > { %s3804_s9 = scalar_lea.hbm %s3963_s14, %s2540_s19  ;;  %p3023_p12 = por %p3022_p9, %p3021_p11 }
 0x4ec   : > { %p3016_p4 = pnand %p3015_p0, %p3964_p2 }
 0x4ee   : > { %p3017_p7 = pneg %p3016_p4 }
 0x4f0   : > { %p3024_p10 = pnand %p3023_p12, %p3017_p7 }
 0x4f2   : > { %3027 = shalt.err (!%p3024_p10)
}
 0x4f3   : > { %s3028_s5 = scalar_lea.hbm %s3804_s9, 256  ;;  %s3032_s27 = scalar_lea.hbm %s3963_s14, 512 }
 0x4f4   : > { %p3029_p3 = scmp.ne.s32.totalorder %s3804_s9, %s3028_s5  ;;  %p3033_p1 = scmp.lt.u32.totalorder %s3804_s9, %s3963_s14 }
 0x4f5   : > { %p3034_p5 = scmp.lt.u32.totalorder %s3032_s27, %s3028_s5  ;;  %p3036_p0 = scmp.lt.u32.totalorder %s3028_s5, %s3804_s9 }
 0x4f6   : > { %p3030_p8 = pnand %p3029_p3, %p3964_p2 }
 0x4f7   : > { %p3035_p6 = por %p3034_p5, %p3033_p1 }
 0x4f8   : > { %p3031_p13 = pneg %p3030_p8 }
 0x4f9   : > { %p3037_p4 = por %p3036_p0, %p3035_p6 }
 0x4fb   : > { %p3038_p7 = pnand %p3037_p4, %p3031_p13 }
 0x4fd   : > { %3041 = shalt.err (!%p3038_p7)
}
 0x4fe   : > { %s3194_s11 = smov 128   ;;  %s3195_s8 = smov 8  }
 0x4ff   : > { %2630 = dma.vmem_to_hbm [thread:$0]  (%p3964_p2), %s3806_s6, 256, %s3804_s9, %s3775_s24, %s3194_s11, %s3194_s11, %s3195_s8  }
 0x500   : > { %s3965_s16 = sld [smem:[#allocation35_spill]]  ;;  %s2155_s18 = sshll.u32 %s3470_s23, 4  ;;  %s3841_s18 = int_to_ptr.vmem [resolvable:$true] %s2155_s18 }
 0x501   : > { %s3042_s5 = scalar_lea.vmem %s3841_s18, 256  ;;  %s3196_s17 = smov [#allocation14]  }
 0x502   : > { %p3043_p11 = scmp.ne.s32.totalorder %s3841_s18, %s3042_s5  ;;  %s3046_s21 = sshll.u32 %s3196_s17, 4  ;;  %s3047_s21 = int_to_ptr.vmem [resolvable:$false] %s3046_s21 }
 0x503   : > { %s3048_s28 = scalar_lea.vmem %s3047_s21, 512  ;;  %p3049_p10 = scmp.lt.s32.totalorder %s3841_s18, %s3047_s21 }
 0x504   : > { %p3044_p9 = pnand %p3043_p11, %p3964_p2  ;;  %p3050_p3 = scmp.lt.s32.totalorder %s3048_s28, %s3042_s5 }
 0x506   : > { %s3838_s13 = scalar_lea.hbm %s3965_s16, %s2540_s19  ;;  %p3045_p12 = pneg %p3044_p9 }
 0x507   : > { %p3051_p8 = por %p3050_p3, %p3049_p10 }
 0x509   : > { %p3052_p13 = pnand %p3051_p8, %p3045_p12 }
 0x50b   : > { %3055 = shalt.err (!%p3052_p13)
}
 0x50c   : > { %s3056_s23 = scalar_lea.hbm %s3838_s13, 256  ;;  %s3060_s9 = scalar_lea.hbm %s3965_s16, 512 }
 0x50d   : > { %p3057_p1 = scmp.ne.s32.totalorder %s3838_s13, %s3056_s23  ;;  %p3061_p0 = scmp.lt.u32.totalorder %s3838_s13, %s3965_s16 }
 0x50e   : > { %p3062_p4 = scmp.lt.u32.totalorder %s3060_s9, %s3056_s23  ;;  %p3064_p11 = scmp.lt.u32.totalorder %s3056_s23, %s3838_s13 }
 0x50f   : > { %p3058_p5 = pnand %p3057_p1, %p3964_p2 }
 0x510   : > { %p3063_p7 = por %p3062_p4, %p3061_p0 }
 0x511   : > { %p3059_p6 = pneg %p3058_p5 }
 0x512   : > { %p3065_p9 = por %p3064_p11, %p3063_p7 }
 0x514   : > { %p3066_p12 = pnand %p3065_p9, %p3059_p6 }
 0x516   : > { %3069 = shalt.err (!%p3066_p12)
}
 0x517   : > { %2631 = dma.vmem_to_hbm [thread:$0]  (%p3964_p2), %s3841_s18, 256, %s3838_s13, %s3775_s24, %s3194_s11, %s3194_s11, %s3195_s8  }
 0x518 PF: > { %s3966_s20 = sld [smem:[#allocation25_spill]]  ;;  %s3967_s4 = sld [smem:[#allocation28_spill]] }
 0x519   : > { %p2656_p10 = scmp.ge.s32.totalorder %s3172_s7, 2 }
 0x51e   : > { %s2170_s15 = sand.u32 1, %s3966_s20   ;;  %p3968_p3 = scmp.ne.s32.totalorder %s3967_s4, 0 }
 0x51f   : > { %s2171_s5 = scalar_lea.sflag [#allocation7], %s2170_s15 }
 0x520   : > { %p2643_p8 = pnand %p2656_p10, %p3968_p3 }
 0x522   : > { %3123 = dma.done.wait (!%p2643_p8), %s2171_s5, 1024  }
 0x523   : > { %3125 = vsyncadd (!%p2643_p8), %s2171_s5, 4294966272  ;;  %s3969_s12 = sadd.s32 4294967294, %s3172_s7   ;;  %s3970_s17 = sld [smem:[#allocation32_spill]] }
 0x524   : > { %s2179_s21 = sand.u32 1, %s3969_s12  }
 0x525   : > { %s2180_s28 = scalar_lea.sflag [#allocation13], %s2179_s21 }
 0x529   : > { %p3971_p13 = scmp.ne.s32.totalorder %s3970_s17, 0 }
 0x52b   : > { %p2646_p1 = pnand %p2656_p10, %p3971_p13 }
 0x52d   : > { %3127 = dma.done.wait (!%p2646_p1), %s2180_s28, 512  }
 0x52e   : > { %3129 = vsyncadd (!%p2646_p1), %s2180_s28, 4294966784  ;;  %s27_s7 = sadd.s32 1, %s3172_s7   ;;  %s3972_s24 = sld [smem:[#allocation24_spill]] }
 0x52f   : > { %p24_p2 = scmp.ge.s32.totalorder %s27_s7, 6   ;;  %s3973_s23 = sld [smem:[#allocation30_spill]] }
 0x530   : > { %s3974_s11 = sld [smem:[#allocation29_spill]]  ;;  %s3975_s8 = sld [smem:[#allocation26_spill]] }
 0x531   : > { %s3976_s13 = sld [smem:[#allocation27_spill]]  ;;  %s3977_s21 = smov %s3136_s22 }
 0x532   : > { %s3982_s27 = smov %s3164_s29  ;;  %s3983_s28 = smov %s3168_s30 }
 0x533   :  { %26 = sbr.rel (!%p24_p2) target bundleno = 16 (0x10), region = 145 }
 0x534   : > { %s3978_s22 = smov %s3972_s24  ;;  %s3979_s24 = smov %s3148_s25 }
 0x535   : > { %s3980_s25 = smov %s3152_s26 }
 0x536   : > { %s3981_s26 = smov %s3974_s11  ;;  %s3984_s29 = smov %s3975_s8 }
 0x537   : > { %s3985_s30 = smov %s3976_s13 }
 0x53a   :  { %2194 = vsyncpa [#allocation6], 1 }
 0x53b   :  { %2196 = vsyncpa [#allocation6 + $0x1], 1 }
 0x53c   :  { %2197 = vsyncpa [#allocation9], 1 }
 0x53d   :  { %2198 = vsyncpa [#allocation7], 1 }
 0x53e   :  { %2200 = vsyncpa [#allocation7 + $0x1], 1 }
 0x53f   :  { %2201 = vsyncpa [#allocation13], 1 }
 0x540   :  { %2203 = vsyncpa [#allocation13 + $0x1], 1 }

</bundles_post_ra>
